<compile_context>
chip_gen: v5e
topology: v5e:2x2
jax: 0.10.0
libtpu: 0.0.40
codegen_flags: <defaults>
</compile_context>

<pallas_src>
import functools

import jax
import jax.numpy as jnp
from jax.experimental import pallas as pl
from jax.experimental.pallas import tpu as pltpu

LANE = 128                         # vreg lane width: pad K and Cout to this
_VMEM_LIMIT_BYTES = 32 * 1024 * 1024


def _round_up(x, m):
    return (x + m - 1) // m * m


# --------------------------------------------------------------------------
# Pallas kernels
# --------------------------------------------------------------------------
def _conv_tiled_kernel(p_ref, w_ref, b_ref, o_ref, *, slope, apply_act):
    """One M-tile of the im2col matmul (+ bias, optional fused LeakyReLU).

    p_ref: (TM, Kp)  bf16      w_ref: (Kp, 128) bf16 (resident across grid)
    b_ref: (1, 128)  f32       o_ref: (TM, 128) f32  (lane-dense store)
    """
    acc = jnp.dot(p_ref[...], w_ref[...], preferred_element_type=jnp.float32)
    acc = acc + b_ref[...]
    if apply_act:
        acc = jnp.where(acc >= 0, acc, slope * acc)
    o_ref[...] = acc


def _conv_in_lrelu_kernel(p_ref, w_ref, b_ref, o_ref, *, slope, eps):
    """Per-sample fused conv + InstanceNorm2d(affine=False) + LeakyReLU.

    p_ref: (1, HW, Kp) bf16    w_ref: (Kp, 128) bf16
    b_ref: (1, 128)    f32     o_ref: (1, HW, 128) f32

    InstanceNorm statistics are per-(sample, channel) over H*W with biased
    variance, matching torch.nn.InstanceNorm2d defaults. Zero-padded channel
    columns stay exactly zero (0 / sqrt(0 + eps) = 0) and are sliced away in
    the wrapper.
    """
    acc = jnp.dot(p_ref[0], w_ref[...], preferred_element_type=jnp.float32)
    acc = acc + b_ref[...]                               # (HW, 128)
    mean = jnp.mean(acc, axis=0, keepdims=True)          # (1, 128)
    diff = acc - mean
    var = jnp.mean(diff * diff, axis=0, keepdims=True)   # biased variance
    y = diff * jax.lax.rsqrt(var + eps)
    o_ref[0] = jnp.where(y >= 0, y, slope * y)


# --------------------------------------------------------------------------
# Wrappers (im2col / packing glue stays in plain JAX)
# --------------------------------------------------------------------------
def _im2col(x_nhwc, kh, kw, stride, pad, k_pad):
    """x: (N,H,W,C) f32 -> patches (N, OH*OW, k_pad) bf16 (K zero-padded)."""
    N, H, W, C = x_nhwc.shape
    xp = jnp.pad(x_nhwc, ((0, 0), (pad, pad), (pad, pad), (0, 0)))
    OH = (H + 2 * pad - kh) // stride + 1
    OW = (W + 2 * pad - kw) // stride + 1
    cols = []
    for i in range(kh):
        for j in range(kw):
            cols.append(
                xp[:,
                   i:i + stride * (OH - 1) + 1:stride,
                   j:j + stride * (OW - 1) + 1:stride,
                   :])                               # (N, OH, OW, C)
    patches = jnp.stack(cols, axis=3)                # (N, OH, OW, KH*KW, C)
    patches = patches.reshape(N, OH * OW, kh * kw * C).astype(jnp.bfloat16)
    k = kh * kw * C
    if k_pad > k:
        patches = jnp.pad(patches, ((0, 0), (0, 0), (0, k_pad - k)))
    return patches, OH, OW


def _pack_weight(w, b, k_pad, c_pad):
    """w: (KH,KW,Cin,Cout) -> (k_pad, c_pad) bf16; b: (Cout,) -> (1, c_pad) f32."""
    kh, kw, cin, cout = w.shape
    k = kh * kw * cin
    w2 = w.reshape(k, cout).astype(jnp.bfloat16)
    w2 = jnp.pad(w2, ((0, k_pad - k), (0, c_pad - cout)))
    b2 = jnp.pad(b.astype(jnp.float32), (0, c_pad - cout)).reshape(1, c_pad)
    return w2, b2


def conv2d_act_pallas(x_nhwc, w, b, *, stride, slope, apply_act, tile_m=512):
    """Conv (+ optional LeakyReLU), tiled over M = N*OH*OW with a parallel grid."""
    kh, kw, cin, cout = w.shape
    k_pad = _round_up(kh * kw * cin, LANE)
    patches, OH, OW = _im2col(x_nhwc, kh, kw, stride, pad=2, k_pad=k_pad)
    N = x_nhwc.shape[0]
    M = N * OH * OW
    patches = patches.reshape(M, k_pad)

    # Tile size: keep 2 x (tile_m*k_pad bf16 + tile_m*128 f32) + weights well
    # inside the scoped VMEM budget on every generation (v7x: 64 MiB physical).
    tile_m = min(tile_m, _round_up(M, LANE))
    M_pad = _round_up(M, tile_m)
    if M_pad > M:
        patches = jnp.pad(patches, ((0, M_pad - M), (0, 0)))
    w2, b2 = _pack_weight(w, b, k_pad, LANE)

    kernel = functools.partial(_conv_tiled_kernel, slope=slope, apply_act=apply_act)
    out = pl.pallas_call(
        kernel,
        out_shape=jax.ShapeDtypeStruct((M_pad, LANE), jnp.float32),
        grid=(M_pad // tile_m,),
        in_specs=[
            pl.BlockSpec((tile_m, k_pad), lambda i: (i, 0)),
            pl.BlockSpec((k_pad, LANE), lambda i: (0, 0)),
            pl.BlockSpec((1, LANE), lambda i: (0, 0)),
        ],
        out_specs=pl.BlockSpec((tile_m, LANE), lambda i: (i, 0)),
        compiler_params=pltpu.CompilerParams(
            dimension_semantics=("parallel",),
            vmem_limit_bytes=_VMEM_LIMIT_BYTES),
    )(patches, w2, b2)
    return out[:M, :cout].reshape(N, OH, OW, cout)


def conv2d_in_lrelu_pallas(x_nhwc, w, b, *, stride, slope, eps):
    """Fused conv + InstanceNorm2d + LeakyReLU; grid over batch (parallel)."""
    kh, kw, cin, cout = w.shape
    k_pad = _round_up(kh * kw * cin, LANE)
    patches, OH, OW = _im2col(x_nhwc, kh, kw, stride, pad=2, k_pad=k_pad)
    N = x_nhwc.shape[0]
    HW = OH * OW
    w2, b2 = _pack_weight(w, b, k_pad, LANE)

    kernel = functools.partial(_conv_in_lrelu_kernel, slope=slope, eps=eps)
    out = pl.pallas_call(
        kernel,
        out_shape=jax.ShapeDtypeStruct((N, HW, LANE), jnp.float32),
        grid=(N,),
        in_specs=[
            pl.BlockSpec((1, HW, k_pad), lambda n: (n, 0, 0)),
            pl.BlockSpec((k_pad, LANE), lambda n: (0, 0)),
            pl.BlockSpec((1, LANE), lambda n: (0, 0)),
        ],
        out_specs=pl.BlockSpec((1, HW, LANE), lambda n: (n, 0, 0)),
        compiler_params=pltpu.CompilerParams(
            dimension_semantics=("parallel",),
            vmem_limit_bytes=_VMEM_LIMIT_BYTES),
    )(patches, w2, b2)
    return out[:, :, :cout].reshape(N, OH, OW, cout)


# --------------------------------------------------------------------------
# cycle_D forward
# --------------------------------------------------------------------------
def init_params(key, in_channel=3, hidden_dim=8, n_layers=3, kw=4):
    """Deterministic synthetic weights; conv weights stored as (KH,KW,Cin,Cout)."""
    chans = [in_channel, hidden_dim]
    mul = 1
    for n in range(1, n_layers):
        mul = min(2 ** n, 8)
        chans.append(hidden_dim * mul)
    chans.append(hidden_dim * min(2 ** n_layers, 8))
    chans.append(1)
    params = []
    for li in range(len(chans) - 1):
        cin, cout = chans[li], chans[li + 1]
        key, kw_key, kb_key = jax.random.split(key, 3)
        w = 0.02 * jax.random.normal(kw_key, (kw, kw, cin, cout), jnp.float32)
        b = 0.01 * jax.random.normal(kb_key, (cout,), jnp.float32)
        params.append((w, b))
    return params


def cycle_d_forward(x_nchw, params, *, slope=0.2, eps=1e-5):
    # NCHW at the boundary (PyTorch convention), NHWC internally.
    x = jnp.transpose(x_nchw, (0, 2, 3, 1)).astype(jnp.float32)

    # layer 0: conv s2 + LeakyReLU (fused in the matmul kernel)
    h = conv2d_act_pallas(x, *params[0], stride=2, slope=slope, apply_act=True)

    # layers 1..2: conv s2 + InstanceNorm + Dropout(0.0)=Id + LeakyReLU (fused)
    h = conv2d_in_lrelu_pallas(h, *params[1], stride=2, slope=slope, eps=eps)
    h = conv2d_in_lrelu_pallas(h, *params[2], stride=2, slope=slope, eps=eps)

    # penultimate: conv s1 + InstanceNorm + LeakyReLU (fused)
    h = conv2d_in_lrelu_pallas(h, *params[3], stride=1, slope=slope, eps=eps)

    # final: conv s1 -> 1 channel, no sigmoid (LSGAN)
    h = conv2d_act_pallas(h, *params[4], stride=1, slope=slope, apply_act=False)

    out_nchw = jnp.transpose(h, (0, 3, 1, 2))
    # use_mask=False -> the returned x is the unmodified input (matches PyTorch).
    return out_nchw, x_nchw


if __name__ == "__main__":
    key = jax.random.PRNGKey(0)
    kx, kp = jax.random.split(key)

    N, C_in, H, W = 2, 3, 16, 16
    x = jax.random.normal(kx, (N, C_in, H, W), jnp.float32)
    params = init_params(kp, in_channel=C_in, hidden_dim=8, n_layers=3)

    fwd = jax.jit(functools.partial(cycle_d_forward, slope=0.2, eps=1e-5))
    logits, x_out = fwd(x, params)
    jax.block_until_ready((logits, x_out))

    assert logits.shape == (N, 1, 5, 5), logits.shape
    assert x_out.shape == (N, C_in, H, W), x_out.shape
    assert bool(jnp.all(jnp.isfinite(logits)))
    print("KERNEL_OK")
</pallas_src>

<mosaic_0001>
module attributes {stable_mosaic.version = 11 : i64} {
  func.func @_conv_tiled_kernel(%arg0: i32, %arg1: memref<256x128xbf16, #tpu.memory_space<vmem>>, %arg2: memref<128x128xbf16, #tpu.memory_space<vmem>>, %arg3: memref<1x128xf32, #tpu.memory_space<vmem>>, %arg4: memref<256x128xf32, #tpu.memory_space<vmem>>) attributes {dimension_semantics = [#tpu.dimension_semantics<parallel>], iteration_bounds = array<i64: 1>, scalar_prefetch = 0 : i64, scratch_operands = 0 : i64, tpu.core_type = #tpu.core_type<tc>, window_params = [{transform_indices = @transform_0, window_bounds = array<i64: 256, 128>}, {pipeline_mode = #tpu.pipeline_mode<synchronous>, transform_indices = @transform_1, window_bounds = array<i64: 128, 128>}, {pipeline_mode = #tpu.pipeline_mode<synchronous>, transform_indices = @transform_2, window_bounds = array<i64: 1, 128>}, {transform_indices = @transform_3, window_bounds = array<i64: 256, 128>}]} {
    %c0 = arith.constant 0 : index
    %c0_0 = arith.constant 0 : index
    %0 = vector.load %arg1[%c0, %c0_0] : memref<256x128xbf16, #tpu.memory_space<vmem>>, vector<256x128xbf16>
    %c0_1 = arith.constant 0 : index
    %c0_2 = arith.constant 0 : index
    %1 = vector.load %arg2[%c0_1, %c0_2] : memref<128x128xbf16, #tpu.memory_space<vmem>>, vector<128x128xbf16>
    %cst = arith.constant dense<0.000000e+00> : vector<256x128xf32>
    %2 = tpu.matmul %0, %1, %cst {dimension_numbers = #tpu.dot_dimension_numbers<[1], [0], [0], [1], [0, 0, 1, 1], [], []>} : vector<256x128xbf16>, vector<128x128xbf16>, vector<256x128xf32> -> vector<256x128xf32>
    %c0_3 = arith.constant 0 : index
    %c0_4 = arith.constant 0 : index
    %3 = vector.load %arg3[%c0_3, %c0_4] : memref<1x128xf32, #tpu.memory_space<vmem>>, vector<1x128xf32>
    %4 = vector.broadcast %3 : vector<1x128xf32> to vector<256x128xf32>
    %5 = arith.addf %2, %4 : vector<256x128xf32>
    %cst_5 = arith.constant 0.000000e+00 : f32
    %6 = vector.broadcast %cst_5 : f32 to vector<256x128xf32>
    %7 = arith.cmpf oge, %5, %6 : vector<256x128xf32>
    %cst_6 = arith.constant 2.000000e-01 : f32
    %8 = vector.broadcast %cst_6 : f32 to vector<256x128xf32>
    %9 = arith.mulf %8, %5 : vector<256x128xf32>
    %10 = arith.select %7, %5, %9 : vector<256x128xi1>, vector<256x128xf32>
    %c0_7 = arith.constant 0 : index
    %c0_8 = arith.constant 0 : index
    %11 = vector.load %arg4[%c0_7, %c0_8] : memref<256x128xf32, #tpu.memory_space<vmem>>, vector<256x128xf32>
    tpu.vector_store %arg4[%c0_7, %c0_8], %10 {strides = array<i32>} : memref<256x128xf32, #tpu.memory_space<vmem>>, vector<256x128xf32>,
    return
  }
  func.func @transform_0(%arg0: i32) -> (i32, i32) {
    %c0_i32 = arith.constant 0 : i32
    %c0_i32_0 = arith.constant 0 : i32
    return %arg0, %c0_i32 : i32, i32
  }
  func.func @transform_1(%arg0: i32) -> (i32, i32) {
    %c0_i32 = arith.constant 0 : i32
    %c0_i32_0 = arith.constant 0 : i32
    %c0_i32_1 = arith.constant 0 : i32
    return %c0_i32, %c0_i32_0 : i32, i32
  }
  func.func @transform_2(%arg0: i32) -> (i32, i32) {
    %c0_i32 = arith.constant 0 : i32
    %c0_i32_0 = arith.constant 0 : i32
    %c0_i32_1 = arith.constant 0 : i32
    return %c0_i32, %c0_i32_0 : i32, i32
  }
  func.func @transform_3(%arg0: i32) -> (i32, i32) {
    %c0_i32 = arith.constant 0 : i32
    %c0_i32_0 = arith.constant 0 : i32
    return %arg0, %c0_i32 : i32, i32
  }
}

module attributes {stable_mosaic.version = 11 : i64} {
  func.func @_conv_in_lrelu_kernel(%arg0: i32, %arg1: memref<1x25x128xbf16, #tpu.memory_space<vmem>>, %arg2: memref<128x128xbf16, #tpu.memory_space<vmem>>, %arg3: memref<1x128xf32, #tpu.memory_space<vmem>>, %arg4: memref<1x25x128xf32, #tpu.memory_space<vmem>>) attributes {dimension_semantics = [#tpu.dimension_semantics<parallel>], iteration_bounds = array<i64: 2>, scalar_prefetch = 0 : i64, scratch_operands = 0 : i64, tpu.core_type = #tpu.core_type<tc>, window_params = [{transform_indices = @transform_0, window_bounds = array<i64: 1, 25, 128>}, {pipeline_mode = #tpu.pipeline_mode<synchronous>, transform_indices = @transform_1, window_bounds = array<i64: 128, 128>}, {pipeline_mode = #tpu.pipeline_mode<synchronous>, transform_indices = @transform_2, window_bounds = array<i64: 1, 128>}, {transform_indices = @transform_3, window_bounds = array<i64: 1, 25, 128>}]} {
    %c0 = arith.constant 0 : index
    %c0_0 = arith.constant 0 : index
    %c0_1 = arith.constant 0 : index
    %0 = vector.load %arg1[%c0, %c0_0, %c0_1] : memref<1x25x128xbf16, #tpu.memory_space<vmem>>, vector<1x25x128xbf16>
    %1 = vector.shape_cast %0 : vector<1x25x128xbf16> to vector<25x128xbf16>
    %c0_2 = arith.constant 0 : index
    %c0_3 = arith.constant 0 : index
    %2 = vector.load %arg2[%c0_2, %c0_3] : memref<128x128xbf16, #tpu.memory_space<vmem>>, vector<128x128xbf16>
    %cst = arith.constant dense<0.000000e+00> : vector<25x128xf32>
    %3 = tpu.matmul %1, %2, %cst {dimension_numbers = #tpu.dot_dimension_numbers<[1], [0], [0], [1], [0, 0, 1, 1], [], []>} : vector<25x128xbf16>, vector<128x128xbf16>, vector<25x128xf32> -> vector<25x128xf32>
    %c0_4 = arith.constant 0 : index
    %c0_5 = arith.constant 0 : index
    %4 = vector.load %arg3[%c0_4, %c0_5] : memref<1x128xf32, #tpu.memory_space<vmem>>, vector<1x128xf32>
    %5 = vector.broadcast %4 : vector<1x128xf32> to vector<25x128xf32>
    %6 = arith.addf %3, %5 : vector<25x128xf32>
    %cst_6 = arith.constant dense<0.000000e+00> : vector<128xf32>
    %7 = vector.multi_reduction <add>, %6, %cst_6 [0] : vector<25x128xf32> to vector<128xf32>
    %8 = vector.shape_cast %7 : vector<128xf32> to vector<1x128xf32>
    %cst_7 = arith.constant 2.500000e+01 : f32
    %9 = vector.broadcast %cst_7 : f32 to vector<1x128xf32>
    %10 = arith.divf %8, %9 : vector<1x128xf32>
    %11 = vector.broadcast %10 : vector<1x128xf32> to vector<25x128xf32>
    %12 = arith.subf %6, %11 : vector<25x128xf32>
    %13 = arith.mulf %12, %12 : vector<25x128xf32>
    %cst_8 = arith.constant dense<0.000000e+00> : vector<128xf32>
    %14 = vector.multi_reduction <add>, %13, %cst_8 [0] : vector<25x128xf32> to vector<128xf32>
    %15 = vector.shape_cast %14 : vector<128xf32> to vector<1x128xf32>
    %cst_9 = arith.constant 2.500000e+01 : f32
    %16 = vector.broadcast %cst_9 : f32 to vector<1x128xf32>
    %17 = arith.divf %15, %16 : vector<1x128xf32>
    %cst_10 = arith.constant 9.99999974E-6 : f32
    %18 = vector.broadcast %cst_10 : f32 to vector<1x128xf32>
    %19 = arith.addf %17, %18 : vector<1x128xf32>
    %20 = math.rsqrt %19 : vector<1x128xf32>
    %21 = vector.broadcast %20 : vector<1x128xf32> to vector<25x128xf32>
    %22 = arith.mulf %12, %21 : vector<25x128xf32>
    %cst_11 = arith.constant 0.000000e+00 : f32
    %23 = vector.broadcast %cst_11 : f32 to vector<25x128xf32>
    %24 = arith.cmpf oge, %22, %23 : vector<25x128xf32>
    %cst_12 = arith.constant 2.000000e-01 : f32
    %25 = vector.broadcast %cst_12 : f32 to vector<25x128xf32>
    %26 = arith.mulf %25, %22 : vector<25x128xf32>
    %27 = arith.select %24, %22, %26 : vector<25x128xi1>, vector<25x128xf32>
    %c0_13 = arith.constant 0 : index
    %c0_14 = arith.constant 0 : index
    %c0_15 = arith.constant 0 : index
    %28 = vector.load %arg4[%c0_13, %c0_14, %c0_15] : memref<1x25x128xf32, #tpu.memory_space<vmem>>, vector<1x25x128xf32>
    %29 = vector.shape_cast %28 : vector<1x25x128xf32> to vector<25x128xf32>
    %30 = vector.shape_cast %27 : vector<25x128xf32> to vector<1x25x128xf32>
    tpu.vector_store %arg4[%c0_13, %c0_14, %c0_15], %30 {strides = array<i32>} : memref<1x25x128xf32, #tpu.memory_space<vmem>>, vector<1x25x128xf32>,
    return
  }
  func.func @transform_0(%arg0: i32) -> (i32, i32, i32) {
    %c0_i32 = arith.constant 0 : i32
    %c0_i32_0 = arith.constant 0 : i32
    %c0_i32_1 = arith.constant 0 : i32
    return %arg0, %c0_i32, %c0_i32_0 : i32, i32, i32
  }
  func.func @transform_1(%arg0: i32) -> (i32, i32) {
    %c0_i32 = arith.constant 0 : i32
    %c0_i32_0 = arith.constant 0 : i32
    %c0_i32_1 = arith.constant 0 : i32
    return %c0_i32, %c0_i32_0 : i32, i32
  }
  func.func @transform_2(%arg0: i32) -> (i32, i32) {
    %c0_i32 = arith.constant 0 : i32
    %c0_i32_0 = arith.constant 0 : i32
    %c0_i32_1 = arith.constant 0 : i32
    return %c0_i32, %c0_i32_0 : i32, i32
  }
  func.func @transform_3(%arg0: i32) -> (i32, i32, i32) {
    %c0_i32 = arith.constant 0 : i32
    %c0_i32_0 = arith.constant 0 : i32
    %c0_i32_1 = arith.constant 0 : i32
    return %arg0, %c0_i32, %c0_i32_0 : i32, i32, i32
  }
}

module attributes {stable_mosaic.version = 11 : i64} {
  func.func @_conv_in_lrelu_kernel(%arg0: i32, %arg1: memref<1x9x256xbf16, #tpu.memory_space<vmem>>, %arg2: memref<256x128xbf16, #tpu.memory_space<vmem>>, %arg3: memref<1x128xf32, #tpu.memory_space<vmem>>, %arg4: memref<1x9x128xf32, #tpu.memory_space<vmem>>) attributes {dimension_semantics = [#tpu.dimension_semantics<parallel>], iteration_bounds = array<i64: 2>, scalar_prefetch = 0 : i64, scratch_operands = 0 : i64, tpu.core_type = #tpu.core_type<tc>, window_params = [{transform_indices = @transform_0, window_bounds = array<i64: 1, 9, 256>}, {pipeline_mode = #tpu.pipeline_mode<synchronous>, transform_indices = @transform_1, window_bounds = array<i64: 256, 128>}, {pipeline_mode = #tpu.pipeline_mode<synchronous>, transform_indices = @transform_2, window_bounds = array<i64: 1, 128>}, {transform_indices = @transform_3, window_bounds = array<i64: 1, 9, 128>}]} {
    %c0 = arith.constant 0 : index
    %c0_0 = arith.constant 0 : index
    %c0_1 = arith.constant 0 : index
    %0 = vector.load %arg1[%c0, %c0_0, %c0_1] : memref<1x9x256xbf16, #tpu.memory_space<vmem>>, vector<1x9x256xbf16>
    %1 = vector.shape_cast %0 : vector<1x9x256xbf16> to vector<9x256xbf16>
    %c0_2 = arith.constant 0 : index
    %c0_3 = arith.constant 0 : index
    %2 = vector.load %arg2[%c0_2, %c0_3] : memref<256x128xbf16, #tpu.memory_space<vmem>>, vector<256x128xbf16>
    %cst = arith.constant dense<0.000000e+00> : vector<9x128xf32>
    %3 = tpu.matmul %1, %2, %cst {dimension_numbers = #tpu.dot_dimension_numbers<[1], [0], [0], [1], [0, 0, 1, 1], [], []>} : vector<9x256xbf16>, vector<256x128xbf16>, vector<9x128xf32> -> vector<9x128xf32>
    %c0_4 = arith.constant 0 : index
    %c0_5 = arith.constant 0 : index
    %4 = vector.load %arg3[%c0_4, %c0_5] : memref<1x128xf32, #tpu.memory_space<vmem>>, vector<1x128xf32>
    %5 = vector.broadcast %4 : vector<1x128xf32> to vector<9x128xf32>
    %6 = arith.addf %3, %5 : vector<9x128xf32>
    %cst_6 = arith.constant dense<0.000000e+00> : vector<128xf32>
    %7 = vector.multi_reduction <add>, %6, %cst_6 [0] : vector<9x128xf32> to vector<128xf32>
    %8 = vector.shape_cast %7 : vector<128xf32> to vector<1x128xf32>
    %cst_7 = arith.constant 9.000000e+00 : f32
    %9 = vector.broadcast %cst_7 : f32 to vector<1x128xf32>
    %10 = arith.divf %8, %9 : vector<1x128xf32>
    %11 = vector.broadcast %10 : vector<1x128xf32> to vector<9x128xf32>
    %12 = arith.subf %6, %11 : vector<9x128xf32>
    %13 = arith.mulf %12, %12 : vector<9x128xf32>
    %cst_8 = arith.constant dense<0.000000e+00> : vector<128xf32>
    %14 = vector.multi_reduction <add>, %13, %cst_8 [0] : vector<9x128xf32> to vector<128xf32>
    %15 = vector.shape_cast %14 : vector<128xf32> to vector<1x128xf32>
    %cst_9 = arith.constant 9.000000e+00 : f32
    %16 = vector.broadcast %cst_9 : f32 to vector<1x128xf32>
    %17 = arith.divf %15, %16 : vector<1x128xf32>
    %cst_10 = arith.constant 9.99999974E-6 : f32
    %18 = vector.broadcast %cst_10 : f32 to vector<1x128xf32>
    %19 = arith.addf %17, %18 : vector<1x128xf32>
    %20 = math.rsqrt %19 : vector<1x128xf32>
    %21 = vector.broadcast %20 : vector<1x128xf32> to vector<9x128xf32>
    %22 = arith.mulf %12, %21 : vector<9x128xf32>
    %cst_11 = arith.constant 0.000000e+00 : f32
    %23 = vector.broadcast %cst_11 : f32 to vector<9x128xf32>
    %24 = arith.cmpf oge, %22, %23 : vector<9x128xf32>
    %cst_12 = arith.constant 2.000000e-01 : f32
    %25 = vector.broadcast %cst_12 : f32 to vector<9x128xf32>
    %26 = arith.mulf %25, %22 : vector<9x128xf32>
    %27 = arith.select %24, %22, %26 : vector<9x128xi1>, vector<9x128xf32>
    %c0_13 = arith.constant 0 : index
    %c0_14 = arith.constant 0 : index
    %c0_15 = arith.constant 0 : index
    %28 = vector.load %arg4[%c0_13, %c0_14, %c0_15] : memref<1x9x128xf32, #tpu.memory_space<vmem>>, vector<1x9x128xf32>
    %29 = vector.shape_cast %28 : vector<1x9x128xf32> to vector<9x128xf32>
    %30 = vector.shape_cast %27 : vector<9x128xf32> to vector<1x9x128xf32>
    tpu.vector_store %arg4[%c0_13, %c0_14, %c0_15], %30 {strides = array<i32>} : memref<1x9x128xf32, #tpu.memory_space<vmem>>, vector<1x9x128xf32>,
    return
  }
  func.func @transform_0(%arg0: i32) -> (i32, i32, i32) {
    %c0_i32 = arith.constant 0 : i32
    %c0_i32_0 = arith.constant 0 : i32
    %c0_i32_1 = arith.constant 0 : i32
    return %arg0, %c0_i32, %c0_i32_0 : i32, i32, i32
  }
  func.func @transform_1(%arg0: i32) -> (i32, i32) {
    %c0_i32 = arith.constant 0 : i32
    %c0_i32_0 = arith.constant 0 : i32
    %c0_i32_1 = arith.constant 0 : i32
    return %c0_i32, %c0_i32_0 : i32, i32
  }
  func.func @transform_2(%arg0: i32) -> (i32, i32) {
    %c0_i32 = arith.constant 0 : i32
    %c0_i32_0 = arith.constant 0 : i32
    %c0_i32_1 = arith.constant 0 : i32
    return %c0_i32, %c0_i32_0 : i32, i32
  }
  func.func @transform_3(%arg0: i32) -> (i32, i32, i32) {
    %c0_i32 = arith.constant 0 : i32
    %c0_i32_0 = arith.constant 0 : i32
    %c0_i32_1 = arith.constant 0 : i32
    return %arg0, %c0_i32, %c0_i32_0 : i32, i32, i32
  }
}

module attributes {stable_mosaic.version = 11 : i64} {
  func.func @_conv_in_lrelu_kernel(%arg0: i32, %arg1: memref<1x16x512xbf16, #tpu.memory_space<vmem>>, %arg2: memref<512x128xbf16, #tpu.memory_space<vmem>>, %arg3: memref<1x128xf32, #tpu.memory_space<vmem>>, %arg4: memref<1x16x128xf32, #tpu.memory_space<vmem>>) attributes {dimension_semantics = [#tpu.dimension_semantics<parallel>], iteration_bounds = array<i64: 2>, scalar_prefetch = 0 : i64, scratch_operands = 0 : i64, tpu.core_type = #tpu.core_type<tc>, window_params = [{transform_indices = @transform_0, window_bounds = array<i64: 1, 16, 512>}, {pipeline_mode = #tpu.pipeline_mode<synchronous>, transform_indices = @transform_1, window_bounds = array<i64: 512, 128>}, {pipeline_mode = #tpu.pipeline_mode<synchronous>, transform_indices = @transform_2, window_bounds = array<i64: 1, 128>}, {transform_indices = @transform_3, window_bounds = array<i64: 1, 16, 128>}]} {
    %c0 = arith.constant 0 : index
    %c0_0 = arith.constant 0 : index
    %c0_1 = arith.constant 0 : index
    %0 = vector.load %arg1[%c0, %c0_0, %c0_1] : memref<1x16x512xbf16, #tpu.memory_space<vmem>>, vector<1x16x512xbf16>
    %1 = vector.shape_cast %0 : vector<1x16x512xbf16> to vector<16x512xbf16>
    %c0_2 = arith.constant 0 : index
    %c0_3 = arith.constant 0 : index
    %2 = vector.load %arg2[%c0_2, %c0_3] : memref<512x128xbf16, #tpu.memory_space<vmem>>, vector<512x128xbf16>
    %cst = arith.constant dense<0.000000e+00> : vector<16x128xf32>
    %3 = tpu.matmul %1, %2, %cst {dimension_numbers = #tpu.dot_dimension_numbers<[1], [0], [0], [1], [0, 0, 1, 1], [], []>} : vector<16x512xbf16>, vector<512x128xbf16>, vector<16x128xf32> -> vector<16x128xf32>
    %c0_4 = arith.constant 0 : index
    %c0_5 = arith.constant 0 : index
    %4 = vector.load %arg3[%c0_4, %c0_5] : memref<1x128xf32, #tpu.memory_space<vmem>>, vector<1x128xf32>
    %5 = vector.broadcast %4 : vector<1x128xf32> to vector<16x128xf32>
    %6 = arith.addf %3, %5 : vector<16x128xf32>
    %cst_6 = arith.constant dense<0.000000e+00> : vector<128xf32>
    %7 = vector.multi_reduction <add>, %6, %cst_6 [0] : vector<16x128xf32> to vector<128xf32>
    %8 = vector.shape_cast %7 : vector<128xf32> to vector<1x128xf32>
    %cst_7 = arith.constant 1.600000e+01 : f32
    %9 = vector.broadcast %cst_7 : f32 to vector<1x128xf32>
    %10 = arith.divf %8, %9 : vector<1x128xf32>
    %11 = vector.broadcast %10 : vector<1x128xf32> to vector<16x128xf32>
    %12 = arith.subf %6, %11 : vector<16x128xf32>
    %13 = arith.mulf %12, %12 : vector<16x128xf32>
    %cst_8 = arith.constant dense<0.000000e+00> : vector<128xf32>
    %14 = vector.multi_reduction <add>, %13, %cst_8 [0] : vector<16x128xf32> to vector<128xf32>
    %15 = vector.shape_cast %14 : vector<128xf32> to vector<1x128xf32>
    %cst_9 = arith.constant 1.600000e+01 : f32
    %16 = vector.broadcast %cst_9 : f32 to vector<1x128xf32>
    %17 = arith.divf %15, %16 : vector<1x128xf32>
    %cst_10 = arith.constant 9.99999974E-6 : f32
    %18 = vector.broadcast %cst_10 : f32 to vector<1x128xf32>
    %19 = arith.addf %17, %18 : vector<1x128xf32>
    %20 = math.rsqrt %19 : vector<1x128xf32>
    %21 = vector.broadcast %20 : vector<1x128xf32> to vector<16x128xf32>
    %22 = arith.mulf %12, %21 : vector<16x128xf32>
    %cst_11 = arith.constant 0.000000e+00 : f32
    %23 = vector.broadcast %cst_11 : f32 to vector<16x128xf32>
    %24 = arith.cmpf oge, %22, %23 : vector<16x128xf32>
    %cst_12 = arith.constant 2.000000e-01 : f32
    %25 = vector.broadcast %cst_12 : f32 to vector<16x128xf32>
    %26 = arith.mulf %25, %22 : vector<16x128xf32>
    %27 = arith.select %24, %22, %26 : vector<16x128xi1>, vector<16x128xf32>
    %c0_13 = arith.constant 0 : index
    %c0_14 = arith.constant 0 : index
    %c0_15 = arith.constant 0 : index
    %28 = vector.load %arg4[%c0_13, %c0_14, %c0_15] : memref<1x16x128xf32, #tpu.memory_space<vmem>>, vector<1x16x128xf32>
    %29 = vector.shape_cast %28 : vector<1x16x128xf32> to vector<16x128xf32>
    %30 = vector.shape_cast %27 : vector<16x128xf32> to vector<1x16x128xf32>
    tpu.vector_store %arg4[%c0_13, %c0_14, %c0_15], %30 {strides = array<i32>} : memref<1x16x128xf32, #tpu.memory_space<vmem>>, vector<1x16x128xf32>,
    return
  }
  func.func @transform_0(%arg0: i32) -> (i32, i32, i32) {
    %c0_i32 = arith.constant 0 : i32
    %c0_i32_0 = arith.constant 0 : i32
    %c0_i32_1 = arith.constant 0 : i32
    return %arg0, %c0_i32, %c0_i32_0 : i32, i32, i32
  }
  func.func @transform_1(%arg0: i32) -> (i32, i32) {
    %c0_i32 = arith.constant 0 : i32
    %c0_i32_0 = arith.constant 0 : i32
    %c0_i32_1 = arith.constant 0 : i32
    return %c0_i32, %c0_i32_0 : i32, i32
  }
  func.func @transform_2(%arg0: i32) -> (i32, i32) {
    %c0_i32 = arith.constant 0 : i32
    %c0_i32_0 = arith.constant 0 : i32
    %c0_i32_1 = arith.constant 0 : i32
    return %c0_i32, %c0_i32_0 : i32, i32
  }
  func.func @transform_3(%arg0: i32) -> (i32, i32, i32) {
    %c0_i32 = arith.constant 0 : i32
    %c0_i32_0 = arith.constant 0 : i32
    %c0_i32_1 = arith.constant 0 : i32
    return %arg0, %c0_i32, %c0_i32_0 : i32, i32, i32
  }
}

module attributes {stable_mosaic.version = 11 : i64} {
  func.func @_conv_tiled_kernel(%arg0: i32, %arg1: memref<128x1024xbf16, #tpu.memory_space<vmem>>, %arg2: memref<1024x128xbf16, #tpu.memory_space<vmem>>, %arg3: memref<1x128xf32, #tpu.memory_space<vmem>>, %arg4: memref<128x128xf32, #tpu.memory_space<vmem>>) attributes {dimension_semantics = [#tpu.dimension_semantics<parallel>], iteration_bounds = array<i64: 1>, scalar_prefetch = 0 : i64, scratch_operands = 0 : i64, tpu.core_type = #tpu.core_type<tc>, window_params = [{transform_indices = @transform_0, window_bounds = array<i64: 128, 1024>}, {pipeline_mode = #tpu.pipeline_mode<synchronous>, transform_indices = @transform_1, window_bounds = array<i64: 1024, 128>}, {pipeline_mode = #tpu.pipeline_mode<synchronous>, transform_indices = @transform_2, window_bounds = array<i64: 1, 128>}, {transform_indices = @transform_3, window_bounds = array<i64: 128, 128>}]} {
    %c0 = arith.constant 0 : index
    %c0_0 = arith.constant 0 : index
    %0 = vector.load %arg1[%c0, %c0_0] : memref<128x1024xbf16, #tpu.memory_space<vmem>>, vector<128x1024xbf16>
    %c0_1 = arith.constant 0 : index
    %c0_2 = arith.constant 0 : index
    %1 = vector.load %arg2[%c0_1, %c0_2] : memref<1024x128xbf16, #tpu.memory_space<vmem>>, vector<1024x128xbf16>
    %cst = arith.constant dense<0.000000e+00> : vector<128x128xf32>
    %2 = tpu.matmul %0, %1, %cst {dimension_numbers = #tpu.dot_dimension_numbers<[1], [0], [0], [1], [0, 0, 1, 1], [], []>} : vector<128x1024xbf16>, vector<1024x128xbf16>, vector<128x128xf32> -> vector<128x128xf32>
    %c0_3 = arith.constant 0 : index
    %c0_4 = arith.constant 0 : index
    %3 = vector.load %arg3[%c0_3, %c0_4] : memref<1x128xf32, #tpu.memory_space<vmem>>, vector<1x128xf32>
    %4 = vector.broadcast %3 : vector<1x128xf32> to vector<128x128xf32>
    %5 = arith.addf %2, %4 : vector<128x128xf32>
    %c0_5 = arith.constant 0 : index
    %c0_6 = arith.constant 0 : index
    %6 = vector.load %arg4[%c0_5, %c0_6] : memref<128x128xf32, #tpu.memory_space<vmem>>, vector<128x128xf32>
    tpu.vector_store %arg4[%c0_5, %c0_6], %5 {strides = array<i32>} : memref<128x128xf32, #tpu.memory_space<vmem>>, vector<128x128xf32>,
    return
  }
  func.func @transform_0(%arg0: i32) -> (i32, i32) {
    %c0_i32 = arith.constant 0 : i32
    %c0_i32_0 = arith.constant 0 : i32
    return %arg0, %c0_i32 : i32, i32
  }
  func.func @transform_1(%arg0: i32) -> (i32, i32) {
    %c0_i32 = arith.constant 0 : i32
    %c0_i32_0 = arith.constant 0 : i32
    %c0_i32_1 = arith.constant 0 : i32
    return %c0_i32, %c0_i32_0 : i32, i32
  }
  func.func @transform_2(%arg0: i32) -> (i32, i32) {
    %c0_i32 = arith.constant 0 : i32
    %c0_i32_0 = arith.constant 0 : i32
    %c0_i32_1 = arith.constant 0 : i32
    return %c0_i32, %c0_i32_0 : i32, i32
  }
  func.func @transform_3(%arg0: i32) -> (i32, i32) {
    %c0_i32 = arith.constant 0 : i32
    %c0_i32_0 = arith.constant 0 : i32
    return %arg0, %c0_i32 : i32, i32
  }
}

</mosaic_0001>

<bundles_post_ra>
// kernel: cycle_d_forward.5
= control target key start
LH: loop header
LB: loop body
LE: loop exit
PB: predicated region body
PF: predicated region fallthrough
CT: control target
= control target key end

     0   :  { %s801_s1 = inlined_call_operand.vmem [shape: bf16[128,128], index: 1, kind: input, shape index: {}]   ;;  %s802_s2 = inlined_call_operand.vmem [shape: f32[1,128], index: 2, kind: input, shape index: {}]   ;;  %s803_s0 = inlined_call_operand.vmem [shape: bf16[256,128], index: 0, kind: input, shape index: {}]   ;;  %s804_s3 = inlined_call_operand.vmem [shape: f32[256,128], index: 3, kind: output, shape index: {}]  }
   0x1   :  { %v550_v0 = vld [vmem:[%s801_s1 + $0x38] sm:$0xff]  ;;  %v549_v1 = vld [vmem:[%s801_s1 + $0x30] sm:$0xff]  ;;  %v548_v2 = vld [vmem:[%s801_s1 + $0x28] sm:$0xff] }
   0x2   :  { %210 = vmatpush.bf16.msra.mxu0 %v550_v0  ;;  %551 = vmatpush.bf16.msra.mxu1 %v550_v0  ;;  %v547_v3 = vld [vmem:[%s801_s1 + $0x20] sm:$0xff]  ;;  %v546_v4 = vld [vmem:[%s801_s1 + $0x18] sm:$0xff]  ;;  %v545_v5 = vld [vmem:[%s801_s1 + $0x10] sm:$0xff] }
   0x3   :  { %552 = vmatpush.bf16.msra.mxu2 %v550_v0  ;;  %553 = vmatpush.bf16.msra.mxu3 %v550_v0  ;;  %v544_v6 = vld [vmem:[%s801_s1 + $0x8] sm:$0xff]  ;;  %v543_v7 = vld [vmem:[%s801_s1] sm:$0xff]  ;;  %v529_v16 = vld [vmem:[%s803_s0 + $0x10] sm:$0xff] }
   0x4   :  { %v527_v8 = vld [vmem:[%s803_s0] sm:$0xff]  ;;  %v528_v12 = vld [vmem:[%s803_s0 + $0x8] sm:$0xff]  ;;  %v533_v17 = vld [vmem:[%s803_s0 + $0x30] sm:$0xff] }
   0x5   :  { %v531_v9 = vld [vmem:[%s803_s0 + $0x20] sm:$0xff]  ;;  %v532_v13 = vld [vmem:[%s803_s0 + $0x28] sm:$0xff]  ;;  %v537_v18 = vld [vmem:[%s803_s0 + $0x50] sm:$0xff] }
   0x6   :  { %211 = vmatpush.bf16.msra.mxu0 %v549_v1  ;;  %554 = vmatpush.bf16.msra.mxu1 %v549_v1  ;;  %v535_v10 = vld [vmem:[%s803_s0 + $0x40] sm:$0xff]  ;;  %v536_v14 = vld [vmem:[%s803_s0 + $0x48] sm:$0xff]  ;;  %v541_v19 = vld [vmem:[%s803_s0 + $0x70] sm:$0xff] }
   0x7   :  { %555 = vmatpush.bf16.msra.mxu2 %v549_v1  ;;  %556 = vmatpush.bf16.msra.mxu3 %v549_v1  ;;  %v539_v11 = vld [vmem:[%s803_s0 + $0x60] sm:$0xff]  ;;  %v540_v15 = vld [vmem:[%s803_s0 + $0x68] sm:$0xff]  ;;  %v530_v20 = vld [vmem:[%s803_s0 + $0x18] sm:$0xff] }
   0x8   :  { %v534_v21 = vld [vmem:[%s803_s0 + $0x38] sm:$0xff]  ;;  %v671_v24 = vld [vmem:[%s802_s2] ss:$0 sm:$0xff] }
   0x9   :  { %v538_v22 = vld [vmem:[%s803_s0 + $0x58] sm:$0xff] }
   0xa   :  { %212 = vmatpush.bf16.msra.mxu0 %v548_v2  ;;  %557 = vmatpush.bf16.msra.mxu1 %v548_v2  ;;  %v542_v23 = vld [vmem:[%s803_s0 + $0x78] sm:$0xff] }
   0xb   :  { %558 = vmatpush.bf16.msra.mxu2 %v548_v2  ;;  %559 = vmatpush.bf16.msra.mxu3 %v548_v2 }
   0xe   :  { %213 = vmatpush.bf16.msra.mxu0 %v547_v3  ;;  %560 = vmatpush.bf16.msra.mxu1 %v547_v3 }
   0xf   :  { %561 = vmatpush.bf16.msra.mxu2 %v547_v3  ;;  %562 = vmatpush.bf16.msra.mxu3 %v547_v3 }
  0x12   :  { %214 = vmatpush.bf16.msra.mxu0 %v546_v4  ;;  %563 = vmatpush.bf16.msra.mxu1 %v546_v4 }
  0x13   :  { %564 = vmatpush.bf16.msra.mxu2 %v546_v4  ;;  %565 = vmatpush.bf16.msra.mxu3 %v546_v4 }
  0x16   :  { %215 = vmatpush.bf16.msra.mxu0 %v545_v5  ;;  %566 = vmatpush.bf16.msra.mxu1 %v545_v5 }
  0x17   :  { %567 = vmatpush.bf16.msra.mxu2 %v545_v5  ;;  %568 = vmatpush.bf16.msra.mxu3 %v545_v5 }
  0x1a   :  { %216 = vmatpush.bf16.msra.mxu0 %v544_v6  ;;  %569 = vmatpush.bf16.msra.mxu1 %v544_v6 }
  0x1b   :  { %570 = vmatpush.bf16.msra.mxu2 %v544_v6  ;;  %571 = vmatpush.bf16.msra.mxu3 %v544_v6 }
  0x1e   :  { %217 = vmatpush.bf16.msra.mxu0 %v543_v7  ;;  %572 = vmatpush.bf16.msra.mxu1 %v543_v7 }
  0x1f   :  { %573 = vmatpush.bf16.msra.mxu2 %v543_v7  ;;  %574 = vmatpush.bf16.msra.mxu3 %v543_v7 }
  0x21   :  { %218 = vmatmul.bf16.vlgmr.msra.gmra.mxu0 %v527_v8  ;;  %238 = vmatmul.bf16.vlgmr.msra.gmra.mxu1 %v531_v9 }
  0x22   :  { %258 = vmatmul.bf16.vlgmr.msra.gmra.mxu2 %v535_v10  ;;  %278 = vmatmul.bf16.vlgmr.msra.gmra.mxu3 %v539_v11 }
  0x31   :  { %223 = vmatmul.bf16.gmra.mxu0 %v528_v12  ;;  %243 = vmatmul.bf16.gmra.mxu1 %v532_v13 }
  0x32   :  { %263 = vmatmul.bf16.gmra.mxu2 %v536_v14  ;;  %283 = vmatmul.bf16.gmra.mxu3 %v540_v15 }
  0x41   :  { %228 = vmatmul.bf16.gmra.mxu0 %v529_v16  ;;  %248 = vmatmul.bf16.gmra.mxu1 %v533_v17 }
  0x42   :  { %268 = vmatmul.bf16.gmra.mxu2 %v537_v18  ;;  %288 = vmatmul.bf16.gmra.mxu3 %v541_v19 }
  0x51   :  { %233 = vmatmul.bf16.gmra.mxu0 %v530_v20  ;;  %253 = vmatmul.bf16.gmra.mxu1 %v534_v21 }
  0x52   :  { %273 = vmatmul.bf16.gmra.mxu2 %v538_v22  ;;  %293 = vmatmul.bf16.gmra.mxu3 %v542_v23 }
  0x9e   :  { %v219_v25 = vpop.f32.mrf.mxu0  ;;  %v239_v26 = vpop.f32.mrf.mxu1 }
  0x9f   :  { %v220_v27 = vadd.f32 %v671_v24, %v219_v25  ;;  %v240_v28 = vadd.f32 %v671_v24, %v239_v26 }
  0xa1   :  { %vm299_vm0 = vcmp.ge.f32.partialorder %v220_v27, 0.0  ;;  %v331_v29 = vmul.f32 0.2, %v220_v27  ;;  %vm307_vm1 = vcmp.ge.f32.partialorder %v240_v28, 0.0  ;;  %v339_v30 = vmul.f32 0.2, %v240_v28 }
  0xa3   :  { %v363_v31 = vsel %vm299_vm0, %v220_v27, %v331_v29  ;;  %v371_v32 = vsel %vm307_vm1, %v240_v28, %v339_v30 }
  0xa4   :  { %395 = vst [vmem:[%s804_s3] sm:$0xff] %v363_v31 }
  0xa5   :  { %403 = vst [vmem:[%s804_s3 + $0x40] sm:$0xff] %v371_v32  ;;  %v259_v33 = vpop.f32.mrf.mxu2  ;;  %v279_v34 = vpop.f32.mrf.mxu3 }
  0xa6   :  { %v260_v35 = vadd.f32 %v671_v24, %v259_v33  ;;  %v280_v36 = vadd.f32 %v671_v24, %v279_v34  ;;  %v221_v37 = vpop.f32.mrf.mxu0  ;;  %v241_v38 = vpop.f32.mrf.mxu1 }
  0xa7   :  { %v222_v39 = vadd.f32 %v671_v24, %v221_v37  ;;  %v242_v40 = vadd.f32 %v671_v24, %v241_v38 }
  0xa8   :  { %vm315_vm2 = vcmp.ge.f32.partialorder %v260_v35, 0.0  ;;  %v347_v41 = vmul.f32 0.2, %v260_v35  ;;  %vm323_vm3 = vcmp.ge.f32.partialorder %v280_v36, 0.0  ;;  %v355_v42 = vmul.f32 0.2, %v280_v36 }
  0xa9   :  { %vm300_vm4 = vcmp.ge.f32.partialorder %v222_v39, 0.0  ;;  %v332_v43 = vmul.f32 0.2, %v222_v39  ;;  %vm308_vm5 = vcmp.ge.f32.partialorder %v242_v40, 0.0  ;;  %v340_v44 = vmul.f32 0.2, %v242_v40 }
  0xaa   :  { %v379_v45 = vsel %vm315_vm2, %v260_v35, %v347_v41  ;;  %v387_v46 = vsel %vm323_vm3, %v280_v36, %v355_v42 }
  0xab   :  { %411 = vst [vmem:[%s804_s3 + $0x80] sm:$0xff] %v379_v45  ;;  %v364_v47 = vsel %vm300_vm4, %v222_v39, %v332_v43  ;;  %v372_v48 = vsel %vm308_vm5, %v242_v40, %v340_v44 }
  0xac   :  { %419 = vst [vmem:[%s804_s3 + $0xc0] sm:$0xff] %v387_v46 }
  0xad   :  { %396 = vst [vmem:[%s804_s3 + $0x8] sm:$0xff] %v364_v47  ;;  %v261_v49 = vpop.f32.mrf.mxu2  ;;  %v281_v50 = vpop.f32.mrf.mxu3 }
  0xae   :  { %404 = vst [vmem:[%s804_s3 + $0x48] sm:$0xff] %v372_v48  ;;  %v262_v51 = vadd.f32 %v671_v24, %v261_v49  ;;  %v282_v52 = vadd.f32 %v671_v24, %v281_v50  ;;  %v224_v53 = vpop.f32.mrf.mxu0  ;;  %v244_v54 = vpop.f32.mrf.mxu1 }
  0xaf   :  { %v225_v55 = vadd.f32 %v671_v24, %v224_v53  ;;  %v245_v56 = vadd.f32 %v671_v24, %v244_v54 }
  0xb0   :  { %vm316_vm6 = vcmp.ge.f32.partialorder %v262_v51, 0.0  ;;  %v348_v57 = vmul.f32 0.2, %v262_v51  ;;  %vm324_vm7 = vcmp.ge.f32.partialorder %v282_v52, 0.0  ;;  %v356_v58 = vmul.f32 0.2, %v282_v52 }
  0xb1   :  { %vm301_vm8 = vcmp.ge.f32.partialorder %v225_v55, 0.0  ;;  %v333_v59 = vmul.f32 0.2, %v225_v55  ;;  %vm309_vm9 = vcmp.ge.f32.partialorder %v245_v56, 0.0  ;;  %v341_v60 = vmul.f32 0.2, %v245_v56 }
  0xb2   :  { %v380_v61 = vsel %vm316_vm6, %v262_v51, %v348_v57  ;;  %v388_v62 = vsel %vm324_vm7, %v282_v52, %v356_v58 }
  0xb3   :  { %412 = vst [vmem:[%s804_s3 + $0x88] sm:$0xff] %v380_v61  ;;  %v365_v63 = vsel %vm301_vm8, %v225_v55, %v333_v59  ;;  %v373_v0 = vsel %vm309_vm9, %v245_v56, %v341_v60 }
  0xb4   :  { %420 = vst [vmem:[%s804_s3 + $0xc8] sm:$0xff] %v388_v62 }
  0xb5   :  { %397 = vst [vmem:[%s804_s3 + $0x10] sm:$0xff] %v365_v63  ;;  %v264_v1 = vpop.f32.mrf.mxu2  ;;  %v284_v2 = vpop.f32.mrf.mxu3 }
  0xb6   :  { %405 = vst [vmem:[%s804_s3 + $0x50] sm:$0xff] %v373_v0  ;;  %v265_v3 = vadd.f32 %v671_v24, %v264_v1  ;;  %v285_v4 = vadd.f32 %v671_v24, %v284_v2  ;;  %v226_v5 = vpop.f32.mrf.mxu0  ;;  %v246_v6 = vpop.f32.mrf.mxu1 }
  0xb7   :  { %v227_v7 = vadd.f32 %v671_v24, %v226_v5  ;;  %v247_v8 = vadd.f32 %v671_v24, %v246_v6 }
  0xb8   :  { %vm317_vm10 = vcmp.ge.f32.partialorder %v265_v3, 0.0  ;;  %v349_v9 = vmul.f32 0.2, %v265_v3  ;;  %vm325_vm11 = vcmp.ge.f32.partialorder %v285_v4, 0.0  ;;  %v357_v10 = vmul.f32 0.2, %v285_v4 }
  0xb9   :  { %vm302_vm12 = vcmp.ge.f32.partialorder %v227_v7, 0.0  ;;  %v334_v11 = vmul.f32 0.2, %v227_v7  ;;  %vm310_vm13 = vcmp.ge.f32.partialorder %v247_v8, 0.0  ;;  %v342_v12 = vmul.f32 0.2, %v247_v8 }
  0xba   :  { %v381_v13 = vsel %vm317_vm10, %v265_v3, %v349_v9  ;;  %v389_v14 = vsel %vm325_vm11, %v285_v4, %v357_v10 }
  0xbb   :  { %413 = vst [vmem:[%s804_s3 + $0x90] sm:$0xff] %v381_v13  ;;  %v366_v15 = vsel %vm302_vm12, %v227_v7, %v334_v11  ;;  %v374_v16 = vsel %vm310_vm13, %v247_v8, %v342_v12 }
  0xbc   :  { %421 = vst [vmem:[%s804_s3 + $0xd0] sm:$0xff] %v389_v14 }
  0xbd   :  { %398 = vst [vmem:[%s804_s3 + $0x18] sm:$0xff] %v366_v15  ;;  %v266_v17 = vpop.f32.mrf.mxu2  ;;  %v286_v18 = vpop.f32.mrf.mxu3 }
  0xbe   :  { %406 = vst [vmem:[%s804_s3 + $0x58] sm:$0xff] %v374_v16  ;;  %v267_v19 = vadd.f32 %v671_v24, %v266_v17  ;;  %v287_v20 = vadd.f32 %v671_v24, %v286_v18  ;;  %v229_v21 = vpop.f32.mrf.mxu0  ;;  %v249_v22 = vpop.f32.mrf.mxu1 }
  0xbf   :  { %v230_v23 = vadd.f32 %v671_v24, %v229_v21  ;;  %v250_v25 = vadd.f32 %v671_v24, %v249_v22 }
  0xc0   :  { %vm318_vm14 = vcmp.ge.f32.partialorder %v267_v19, 0.0  ;;  %v350_v26 = vmul.f32 0.2, %v267_v19  ;;  %vm326_vm15 = vcmp.ge.f32.partialorder %v287_v20, 0.0  ;;  %v358_v27 = vmul.f32 0.2, %v287_v20 }
  0xc1   :  { %vm303_vm0 = vcmp.ge.f32.partialorder %v230_v23, 0.0  ;;  %v335_v28 = vmul.f32 0.2, %v230_v23  ;;  %vm311_vm1 = vcmp.ge.f32.partialorder %v250_v25, 0.0  ;;  %v343_v29 = vmul.f32 0.2, %v250_v25 }
  0xc2   :  { %v382_v30 = vsel %vm318_vm14, %v267_v19, %v350_v26  ;;  %v390_v31 = vsel %vm326_vm15, %v287_v20, %v358_v27 }
  0xc3   :  { %414 = vst [vmem:[%s804_s3 + $0x98] sm:$0xff] %v382_v30  ;;  %v367_v32 = vsel %vm303_vm0, %v230_v23, %v335_v28  ;;  %v375_v33 = vsel %vm311_vm1, %v250_v25, %v343_v29 }
  0xc4   :  { %422 = vst [vmem:[%s804_s3 + $0xd8] sm:$0xff] %v390_v31 }
  0xc5   :  { %399 = vst [vmem:[%s804_s3 + $0x20] sm:$0xff] %v367_v32  ;;  %v269_v34 = vpop.f32.mrf.mxu2  ;;  %v289_v35 = vpop.f32.mrf.mxu3 }
  0xc6   :  { %407 = vst [vmem:[%s804_s3 + $0x60] sm:$0xff] %v375_v33  ;;  %v270_v36 = vadd.f32 %v671_v24, %v269_v34  ;;  %v290_v37 = vadd.f32 %v671_v24, %v289_v35  ;;  %v231_v38 = vpop.f32.mrf.mxu0  ;;  %v251_v39 = vpop.f32.mrf.mxu1 }
  0xc7   :  { %v232_v40 = vadd.f32 %v671_v24, %v231_v38  ;;  %v252_v41 = vadd.f32 %v671_v24, %v251_v39 }
  0xc8   :  { %vm319_vm2 = vcmp.ge.f32.partialorder %v270_v36, 0.0  ;;  %v351_v42 = vmul.f32 0.2, %v270_v36  ;;  %vm327_vm3 = vcmp.ge.f32.partialorder %v290_v37, 0.0  ;;  %v359_v43 = vmul.f32 0.2, %v290_v37 }
  0xc9   :  { %vm304_vm4 = vcmp.ge.f32.partialorder %v232_v40, 0.0  ;;  %v336_v44 = vmul.f32 0.2, %v232_v40  ;;  %vm312_vm5 = vcmp.ge.f32.partialorder %v252_v41, 0.0  ;;  %v344_v45 = vmul.f32 0.2, %v252_v41 }
  0xca   :  { %v383_v46 = vsel %vm319_vm2, %v270_v36, %v351_v42  ;;  %v391_v47 = vsel %vm327_vm3, %v290_v37, %v359_v43 }
  0xcb   :  { %415 = vst [vmem:[%s804_s3 + $0xa0] sm:$0xff] %v383_v46  ;;  %v368_v48 = vsel %vm304_vm4, %v232_v40, %v336_v44  ;;  %v376_v49 = vsel %vm312_vm5, %v252_v41, %v344_v45 }
  0xcc   :  { %423 = vst [vmem:[%s804_s3 + $0xe0] sm:$0xff] %v391_v47 }
  0xcd   :  { %400 = vst [vmem:[%s804_s3 + $0x28] sm:$0xff] %v368_v48  ;;  %v271_v50 = vpop.f32.mrf.mxu2  ;;  %v291_v51 = vpop.f32.mrf.mxu3 }
  0xce   :  { %408 = vst [vmem:[%s804_s3 + $0x68] sm:$0xff] %v376_v49  ;;  %v272_v52 = vadd.f32 %v671_v24, %v271_v50  ;;  %v292_v53 = vadd.f32 %v671_v24, %v291_v51  ;;  %v234_v54 = vpop.f32.mrf.mxu0  ;;  %v254_v55 = vpop.f32.mrf.mxu1 }
  0xcf   :  { %v235_v56 = vadd.f32 %v671_v24, %v234_v54  ;;  %v255_v57 = vadd.f32 %v671_v24, %v254_v55 }
  0xd0   :  { %vm320_vm6 = vcmp.ge.f32.partialorder %v272_v52, 0.0  ;;  %v352_v58 = vmul.f32 0.2, %v272_v52  ;;  %vm328_vm7 = vcmp.ge.f32.partialorder %v292_v53, 0.0  ;;  %v360_v59 = vmul.f32 0.2, %v292_v53 }
  0xd1   :  { %vm305_vm8 = vcmp.ge.f32.partialorder %v235_v56, 0.0  ;;  %v337_v60 = vmul.f32 0.2, %v235_v56  ;;  %vm313_vm9 = vcmp.ge.f32.partialorder %v255_v57, 0.0  ;;  %v345_v61 = vmul.f32 0.2, %v255_v57 }
  0xd2   :  { %v384_v62 = vsel %vm320_vm6, %v272_v52, %v352_v58  ;;  %v392_v63 = vsel %vm328_vm7, %v292_v53, %v360_v59 }
  0xd3   :  { %416 = vst [vmem:[%s804_s3 + $0xa8] sm:$0xff] %v384_v62  ;;  %v369_v0 = vsel %vm305_vm8, %v235_v56, %v337_v60  ;;  %v377_v1 = vsel %vm313_vm9, %v255_v57, %v345_v61 }
  0xd4   :  { %424 = vst [vmem:[%s804_s3 + $0xe8] sm:$0xff] %v392_v63 }
  0xd5   :  { %401 = vst [vmem:[%s804_s3 + $0x30] sm:$0xff] %v369_v0  ;;  %v274_v2 = vpop.f32.mrf.mxu2  ;;  %v294_v3 = vpop.f32.mrf.mxu3 }
  0xd6   :  { %409 = vst [vmem:[%s804_s3 + $0x70] sm:$0xff] %v377_v1  ;;  %v275_v4 = vadd.f32 %v671_v24, %v274_v2  ;;  %v295_v5 = vadd.f32 %v671_v24, %v294_v3  ;;  %v236_v6 = vpop.f32.mrf.mxu0  ;;  %v256_v7 = vpop.f32.mrf.mxu1 }
  0xd7   :  { %v237_v8 = vadd.f32 %v671_v24, %v236_v6  ;;  %v257_v9 = vadd.f32 %v671_v24, %v256_v7 }
  0xd8   :  { %vm321_vm10 = vcmp.ge.f32.partialorder %v275_v4, 0.0  ;;  %v353_v10 = vmul.f32 0.2, %v275_v4  ;;  %vm329_vm11 = vcmp.ge.f32.partialorder %v295_v5, 0.0  ;;  %v361_v11 = vmul.f32 0.2, %v295_v5 }
  0xd9   :  { %vm306_vm12 = vcmp.ge.f32.partialorder %v237_v8, 0.0  ;;  %v338_v12 = vmul.f32 0.2, %v237_v8  ;;  %vm314_vm13 = vcmp.ge.f32.partialorder %v257_v9, 0.0  ;;  %v346_v13 = vmul.f32 0.2, %v257_v9 }
  0xda   :  { %v385_v14 = vsel %vm321_vm10, %v275_v4, %v353_v10  ;;  %v393_v15 = vsel %vm329_vm11, %v295_v5, %v361_v11 }
  0xdb   :  { %417 = vst [vmem:[%s804_s3 + $0xb0] sm:$0xff] %v385_v14  ;;  %v370_v16 = vsel %vm306_vm12, %v237_v8, %v338_v12  ;;  %v378_v17 = vsel %vm314_vm13, %v257_v9, %v346_v13 }
  0xdc   :  { %425 = vst [vmem:[%s804_s3 + $0xf0] sm:$0xff] %v393_v15 }
  0xdd   :  { %402 = vst [vmem:[%s804_s3 + $0x38] sm:$0xff] %v370_v16  ;;  %v276_v18 = vpop.f32.mrf.mxu2  ;;  %v296_v19 = vpop.f32.mrf.mxu3 }
  0xde   :  { %410 = vst [vmem:[%s804_s3 + $0x78] sm:$0xff] %v378_v17  ;;  %v277_v20 = vadd.f32 %v671_v24, %v276_v18  ;;  %v297_v21 = vadd.f32 %v671_v24, %v296_v19 }
  0xe0   :  { %vm322_vm14 = vcmp.ge.f32.partialorder %v277_v20, 0.0  ;;  %v354_v22 = vmul.f32 0.2, %v277_v20  ;;  %vm330_vm15 = vcmp.ge.f32.partialorder %v297_v21, 0.0  ;;  %v362_v23 = vmul.f32 0.2, %v297_v21 }
  0xe2   :  { %v386_v25 = vsel %vm322_vm14, %v277_v20, %v354_v22  ;;  %v394_v26 = vsel %vm330_vm15, %v297_v21, %v362_v23 }
  0xe3   :  { %418 = vst [vmem:[%s804_s3 + $0xb8] sm:$0xff] %v386_v25 }
  0xe4   :  { %426 = vst [vmem:[%s804_s3 + $0xf8] sm:$0xff] %v394_v26 }

// kernel: cycle_d_forward.6
= control target key start
LH: loop header
LB: loop body
LE: loop exit
PB: predicated region body
PF: predicated region fallthrough
CT: control target
= control target key end

     0   :  { %s512_s12 = smov 0   ;;  %s562_s0 = inlined_call_operand.vmem [shape: bf16[2,25,128], index: 0, kind: input, shape index: {}]   ;;  %s563_s1 = inlined_call_operand.vmem [shape: bf16[128,128], index: 1, kind: input, shape index: {}]   ;;  %s564_s2 = inlined_call_operand.vmem [shape: f32[1,128], index: 2, kind: input, shape index: {}]   ;;  %s565_s3 = inlined_call_operand.vmem [shape: f32[2,25,128], index: 3, kind: output, shape index: {}]  }
   0x1 LB: > { %s398_s13 = sadd.s32 4294967295, %s489_s12   ;;  %p402_p0 = scmp.ge.s32.totalorder %s489_s12, 1  ;;  %s489_s12 = sphi %s512_s12, %s13_s12  }
   0x2   : > { %p137_p1 = scmp.lt.s32.totalorder %s489_s12, 3 }
   0x4   : > { %p138_p2 = pnand %p402_p0, %p137_p1 }
   0x5   : > { %p161_p3 = scmp.lt.s32.totalorder (!%p138_p2), %s398_s13, 1 }
   0x6   : > { %141 = sbr.rel (%p138_p2) target bundleno = 253 (0xfd), region = 32 }
   0xb   : > { %v460_v0 = vld [vmem:[%s563_s1 + $0x38] sm:$0xff]  ;;  %v459_v1 = vld [vmem:[%s563_s1 + $0x30] sm:$0xff]  ;;  %v458_v2 = vld [vmem:[%s563_s1 + $0x28] sm:$0xff]  ;;  %s567_s13 = smov (!%p161_p3, %s398_s13), 1  ;;  %v491_v14 = vmov 25.0   ;;  %vm276_vm0 = vcmask 1040384  }
   0xc   : > { %255 = vmatpush.bf16.msra.mxu0 %v460_v0  ;;  %461 = vmatpush.bf16.msra.mxu1 %v460_v0  ;;  %v457_v3 = vld [vmem:[%s563_s1 + $0x20] sm:$0xff]  ;;  %v456_v4 = vld [vmem:[%s563_s1 + $0x18] sm:$0xff]  ;;  %v455_v5 = vld [vmem:[%s563_s1 + $0x10] sm:$0xff]  ;;  %s449_s26 = sshll.u32 %s567_s13, 4  ;;  %479 = vrcp.f32 %v491_v14  ;;  %s450_s9 = sshll.u32 %s567_s13, 5 }
   0xd   : > { %v454_v6 = vld [vmem:[%s563_s1 + $0x8] sm:$0xff]  ;;  %s165_s4 = scalar_lea.vmem %s562_s0, %s449_s26  ;;  %v453_v7 = vld [vmem:[%s563_s1] sm:$0xff]  ;;  %s170_s14 = scalar_lea.vmem %s565_s3, %s450_s9 }
   0xe   : > { %v413_v8 = vld [vmem:[%s165_s4 + $0x8] sm:$0xf]  ;;  %v452_v9 = vld [vmem:[%s165_s4 + $0x8] sm:$0x10]  ;;  %v451_v10 = vld [vmem:[%s165_s4] sm:$0xff] }
   0xf   : > { %v414_v11 = vor.u32 %v452_v9, %v413_v8  ;;  %v478_v15 = vld [vmem:[%s564_s2] ss:$0 sm:$0xff] }
  0x10   : > { %256 = vmatpush.bf16.msra.mxu0 %v459_v1  ;;  %462 = vmatpush.bf16.msra.mxu1 %v459_v1 }
  0x12   : > { %v480_v16 = vpop.eup %479 }
  0x13   : > { %v286_v22 = vmul.f32 25.0, %v480_v16  ;;  %vm290_vm1 = vweird.f32 %v480_v16 }
  0x14   : > { %257 = vmatpush.bf16.msra.mxu0 %v458_v2  ;;  %463 = vmatpush.bf16.msra.mxu1 %v458_v2 }
  0x15   : > { %v287_v27 = vsub.f32 1.0, %v286_v22 }
  0x17   : > { %v288_v30 = vmul.f32 %v480_v16, %v287_v27 }
  0x18   : > { %258 = vmatpush.bf16.msra.mxu0 %v457_v3  ;;  %464 = vmatpush.bf16.msra.mxu1 %v457_v3 }
  0x19   : > { %v289_v33 = vadd.f32 %v480_v16, %v288_v30 }
  0x1b   : > { %v291_v36 = vsel %vm290_vm1, %v480_v16, %v289_v33 }
  0x1c   : > { %259 = vmatpush.bf16.msra.mxu0 %v456_v4  ;;  %465 = vmatpush.bf16.msra.mxu1 %v456_v4 }
  0x20   : > { %260 = vmatpush.bf16.msra.mxu0 %v455_v5  ;;  %466 = vmatpush.bf16.msra.mxu1 %v455_v5 }
  0x24   : > { %261 = vmatpush.bf16.msra.mxu0 %v454_v6  ;;  %467 = vmatpush.bf16.msra.mxu1 %v454_v6 }
  0x28   : > { %262 = vmatpush.bf16.msra.mxu0 %v453_v7  ;;  %468 = vmatpush.bf16.msra.mxu1 %v453_v7 }
  0x2b   : > { %263 = vmatmul.bf16.vlgmr.msra.gmra.mxu0 %v451_v10  ;;  %268 = vmatmul.bf16.vlgmr.msra.gmra.mxu1 %v414_v11 }
  0xa8   : > { %v264_v12 = vpop.f32.mrf.mxu0  ;;  %v269_v13 = vpop.f32.mrf.mxu1 }
  0xa9   : > { %v265_v19 = vadd.f32 %v478_v15, %v264_v12  ;;  %v270_v23 = vadd.f32 %v478_v15, %v269_v13 }
  0xb0   : > { %v266_v17 = vpop.f32.mrf.mxu0  ;;  %v271_v18 = vpop.f32.mrf.mxu1 }
  0xb1   : > { %v267_v20 = vadd.f32 %v478_v15, %v266_v17  ;;  %v272_v21 = vadd.f32 %v478_v15, %v271_v18 }
  0xb3   : > { %v274_v24 = vadd.f32 %v267_v20, %v265_v19  ;;  %v277_v26 = vsel %vm276_vm0, %v272_v21, 0.0 }
  0xb5   : > { %v275_v25 = vadd.f32 %v274_v24, %v270_v23 }
  0xb7   : > { %v278_v28 = vadd.f32 %v277_v26, %v275_v25 }
  0xb9   : > { %v279_v29 = vrot.slane %v278_v28, 4 }
  0xbb   : > { %v280_v31 = vadd.f32 %v279_v29, %v278_v28 }
  0xbd   : > { %v281_v32 = vrot.slane %v280_v31, 2 }
  0xbf   : > { %v282_v34 = vadd.f32 %v281_v32, %v280_v31 }
  0xc1   : > { %v283_v35 = vrot.slane %v282_v34, 1 }
  0xc3   : > { %v284_v37 = vadd.f32 %v283_v35, %v282_v34 }
  0xc5   : > { %v292_v38 = vmul.f32 %v291_v36, %v284_v37 }
  0xc7   : > { %v293_v39 = vsub.f32 %v265_v19, %v292_v38  ;;  %v294_v40 = vsub.f32 %v267_v20, %v292_v38  ;;  %v295_v41 = vsub.f32 %v270_v23, %v292_v38  ;;  %v296_v42 = vsub.f32 %v272_v21, %v292_v38 }
  0xc9   : > { %v297_v43 = vmul.f32 %v293_v39, %v293_v39  ;;  %v298_v44 = vmul.f32 %v294_v40, %v294_v40  ;;  %v300_v45 = vmul.f32 %v296_v42, %v296_v42  ;;  %v299_v46 = vmul.f32 %v295_v41, %v295_v41 }
  0xcb   : > { %v301_v47 = vadd.f32 %v298_v44, %v297_v43  ;;  %v303_v49 = vsel %vm276_vm0, %v300_v45, 0.0 }
  0xcd   : > { %v302_v48 = vadd.f32 %v301_v47, %v299_v46 }
  0xcf   : > { %v304_v50 = vadd.f32 %v303_v49, %v302_v48 }
  0xd1   : > { %v305_v51 = vrot.slane %v304_v50, 4 }
  0xd3   : > { %v306_v52 = vadd.f32 %v305_v51, %v304_v50 }
  0xd5   : > { %v307_v53 = vrot.slane %v306_v52, 2 }
  0xd7   : > { %v308_v54 = vadd.f32 %v307_v53, %v306_v52 }
  0xd9   : > { %v309_v55 = vrot.slane %v308_v54, 1 }
  0xdb   : > { %v310_v56 = vadd.f32 %v309_v55, %v308_v54 }
  0xdd   : > { %v311_v57 = vmul.f32 %v310_v56, %v291_v36 }
  0xdf   : > { %v312_v58 = vadd.f32 1e-05, %v311_v57 }
  0xe1   : > { %481 = vrsqrt.f32 %v312_v58  ;;  %vm319_vm3 = vweird.f32 %v312_v58 }
  0xe7   : > { %v482_v59 = vpop.eup %481 }
  0xe8   : > { %v314_v60 = vmul.f32 %v482_v59, %v312_v58  ;;  %vm320_vm2 = vweird.f32 %v482_v59 }
  0xe9   : > { %vm321_vm4 = vmor %vm319_vm3, %vm320_vm2 }
  0xea   : > { %v315_v61 = vmul.f32 %v482_v59, %v314_v60 }
  0xec   : > { %v316_v62 = vmul.f32 0.5, %v315_v61 }
  0xee   : > { %v317_v63 = vsub.f32 1.5, %v316_v62 }
  0xf0   : > { %v318_v0 = vmul.f32 %v482_v59, %v317_v63 }
  0xf2   : > { %v322_v1 = vsel %vm321_vm4, %v482_v59, %v318_v0 }
  0xf3   : > { %v323_v2 = vmul.f32 %v322_v1, %v293_v39  ;;  %v324_v3 = vmul.f32 %v322_v1, %v294_v40  ;;  %v325_v4 = vmul.f32 %v322_v1, %v295_v41  ;;  %v326_v5 = vmul.f32 %v322_v1, %v296_v42 }
  0xf5   : > { %vm327_vm5 = vcmp.ge.f32.partialorder %v323_v2, 0.0  ;;  %vm328_vm6 = vcmp.ge.f32.partialorder %v324_v3, 0.0  ;;  %vm329_vm7 = vcmp.ge.f32.partialorder %v325_v4, 0.0  ;;  %vm330_vm8 = vcmp.ge.f32.partialorder %v326_v5, 0.0 }
  0xf6   : > { %v331_v6 = vmul.f32 0.2, %v323_v2  ;;  %v332_v7 = vmul.f32 0.2, %v324_v3  ;;  %v333_v8 = vmul.f32 0.2, %v325_v4 }
  0xf7   : > { %v334_v9 = vmul.f32 0.2, %v326_v5 }
  0xf8   : > { %v335_v10 = vsel %vm327_vm5, %v323_v2, %v331_v6  ;;  %v336_v11 = vsel %vm328_vm6, %v324_v3, %v332_v7  ;;  %v337_v12 = vsel %vm329_vm7, %v325_v4, %v333_v8 }
  0xf9   : > { %v338_v13 = vsel %vm330_vm8, %v326_v5, %v334_v9  ;;  %339 = vst [vmem:[%s170_s14] sm:$0xff] %v335_v10 }
  0xfa   : > { %340 = vst [vmem:[%s170_s14 + $0x8] sm:$0xff] %v336_v11 }
  0xfb   : > { %341 = vst [vmem:[%s170_s14 + $0x10] sm:$0xff] %v337_v12 }
  0xfc   : > { %342 = vst [vmem:[%s170_s14 + $0x18] sm:$0x1] %v338_v13 }
  0xfd PF: > { %s13_s12 = sadd.s32 1, %s489_s12  }
  0xfe   : > { %p10_p4 = scmp.ge.s32.totalorder %s13_s12, 4  }
 0x100   :  { %12 = sbr.rel (!%p10_p4) target bundleno = 1 (0x1), region = 62 }

// kernel: cycle_d_forward.7
= control target key start
LH: loop header
LB: loop body
LE: loop exit
PB: predicated region body
PF: predicated region fallthrough
CT: control target
= control target key end

     0   :  { %s595_s12 = smov 0   ;;  %s672_s0 = inlined_call_operand.vmem [shape: bf16[2,9,256], index: 0, kind: input, shape index: {}]   ;;  %s673_s1 = inlined_call_operand.vmem [shape: bf16[256,128], index: 1, kind: input, shape index: {}]   ;;  %s674_s2 = inlined_call_operand.vmem [shape: f32[1,128], index: 2, kind: input, shape index: {}]   ;;  %s675_s3 = inlined_call_operand.vmem [shape: f32[2,9,128], index: 3, kind: output, shape index: {}]  }
   0x1 LB: > { %s449_s13 = sadd.s32 4294967295, %s572_s12   ;;  %p453_p0 = scmp.ge.s32.totalorder %s572_s12, 1  ;;  %s572_s12 = sphi %s595_s12, %s13_s12  }
   0x2   : > { %p137_p1 = scmp.lt.s32.totalorder %s572_s12, 3 }
   0x4   : > { %p138_p2 = pnand %p453_p0, %p137_p1 }
   0x5   : > { %p161_p3 = scmp.lt.s32.totalorder (!%p138_p2), %s449_s13, 1 }
   0x6   : > { %141 = sbr.rel (%p138_p2) target bundleno = 246 (0xf6), region = 32 }
   0xb   : > { %v543_v0 = vld [vmem:[%s673_s1 + $0x38] sm:$0xff]  ;;  %v542_v2 = vld [vmem:[%s673_s1 + $0x30] sm:$0xff]  ;;  %v541_v4 = vld [vmem:[%s673_s1 + $0x28] sm:$0xff]  ;;  %s677_s13 = smov (!%p161_p3, %s449_s13), 1  ;;  %v574_v24 = vmov 9.0   ;;  %vm343_vm0 = vcmask 1040384  }
   0xc   : > { %v551_v1 = vld [vmem:[%s673_s1 + $0x78] sm:$0xff]  ;;  %315 = vmatpush.bf16.msra.mxu0 %v543_v0  ;;  %v550_v3 = vld [vmem:[%s673_s1 + $0x70] sm:$0xff]  ;;  %v549_v5 = vld [vmem:[%s673_s1 + $0x68] sm:$0xff]  ;;  %s532_s11 = sshll.u32 %s677_s13, 4  ;;  %562 = vrcp.f32 %v574_v24 }
   0xd   : > { %329 = vmatpush.bf16.msra.mxu1 %v551_v1  ;;  %v540_v6 = vld [vmem:[%s673_s1 + $0x20] sm:$0xff]  ;;  %v539_v8 = vld [vmem:[%s673_s1 + $0x18] sm:$0xff]  ;;  %v538_v10 = vld [vmem:[%s673_s1 + $0x10] sm:$0xff]  ;;  %s165_s20 = scalar_lea.vmem %s672_s0, %s532_s11  ;;  %s170_s29 = scalar_lea.vmem %s675_s3, %s532_s11 }
   0xe   : > { %v548_v7 = vld [vmem:[%s673_s1 + $0x60] sm:$0xff]  ;;  %v547_v9 = vld [vmem:[%s673_s1 + $0x58] sm:$0xff]  ;;  %v546_v11 = vld [vmem:[%s673_s1 + $0x50] sm:$0xff] }
   0xf   : > { %v537_v12 = vld [vmem:[%s673_s1 + $0x8] sm:$0xff]  ;;  %v536_v14 = vld [vmem:[%s673_s1] sm:$0xff] }
  0x10   : > { %316 = vmatpush.bf16.msra.mxu0 %v542_v2  ;;  %v545_v13 = vld [vmem:[%s673_s1 + $0x48] sm:$0xff]  ;;  %v544_v15 = vld [vmem:[%s673_s1 + $0x40] sm:$0xff] }
  0x11   : > { %330 = vmatpush.bf16.msra.mxu1 %v550_v3  ;;  %v460_v16 = vld [vmem:[%s165_s20] sm:$0xf]  ;;  %v535_v17 = vld [vmem:[%s165_s20 + $0x4] sm:$0x10]  ;;  %v534_v18 = vld [vmem:[%s165_s20 + $0x4] sm:$0xf] }
  0x12   : > { %v462_v19 = vld [vmem:[%s165_s20 + $0x8] sm:$0x10]  ;;  %v461_v20 = vor.u32 %v535_v17, %v460_v16  ;;  %v561_v25 = vld [vmem:[%s674_s2] ss:$0 sm:$0xff]  ;;  %v563_v26 = vpop.eup %562 }
  0x13   : > { %v465_v21 = vor.u32 %v534_v18, %v462_v19  ;;  %v353_v30 = vmul.f32 9.0, %v563_v26  ;;  %vm357_vm1 = vweird.f32 %v563_v26 }
  0x14   : > { %317 = vmatpush.bf16.msra.mxu0 %v541_v4 }
  0x15   : > { %331 = vmatpush.bf16.msra.mxu1 %v549_v5  ;;  %v354_v35 = vsub.f32 1.0, %v353_v30 }
  0x17   : > { %v355_v38 = vmul.f32 %v563_v26, %v354_v35 }
  0x18   : > { %318 = vmatpush.bf16.msra.mxu0 %v540_v6 }
  0x19   : > { %332 = vmatpush.bf16.msra.mxu1 %v548_v7  ;;  %v356_v41 = vadd.f32 %v563_v26, %v355_v38 }
  0x1b   : > { %v358_v44 = vsel %vm357_vm1, %v563_v26, %v356_v41 }
  0x1c   : > { %319 = vmatpush.bf16.msra.mxu0 %v539_v8 }
  0x1d   : > { %333 = vmatpush.bf16.msra.mxu1 %v547_v9 }
  0x20   : > { %320 = vmatpush.bf16.msra.mxu0 %v538_v10 }
  0x21   : > { %334 = vmatpush.bf16.msra.mxu1 %v546_v11 }
  0x24   : > { %321 = vmatpush.bf16.msra.mxu0 %v537_v12 }
  0x25   : > { %335 = vmatpush.bf16.msra.mxu1 %v545_v13 }
  0x28   : > { %322 = vmatpush.bf16.msra.mxu0 %v536_v14 }
  0x29   : > { %336 = vmatpush.bf16.msra.mxu1 %v544_v15 }
  0x2b   : > { %323 = vmatmul.bf16.vlgmr.msra.gmra.mxu0 %v461_v20 }
  0x2c   : > { %337 = vmatmul.bf16.vlgmr.msra.gmra.mxu1 %v465_v21 }
  0xa8   : > { %v324_v22 = vpop.f32.mrf.mxu0 }
  0xa9   : > { %v338_v23 = vpop.f32.mrf.mxu1  ;;  %v325_v27 = vadd.f32 %v561_v25, %v324_v22 }
  0xab   : > { %v339_v33 = vadd.f32 %v338_v23, %v325_v27 }
  0xb0   : > { %v326_v28 = vpop.f32.mrf.mxu0 }
  0xb1   : > { %v327_v29 = vadd.f32 %v561_v25, %v326_v28  ;;  %v340_v31 = vpop.f32.mrf.mxu1 }
  0xb3   : > { %v341_v32 = vadd.f32 %v340_v31, %v327_v29 }
  0xb5   : > { %v344_v34 = vsel %vm343_vm0, %v341_v32, 0.0 }
  0xb6   : > { %v345_v36 = vadd.f32 %v344_v34, %v339_v33 }
  0xb8   : > { %v346_v37 = vrot.slane %v345_v36, 4 }
  0xba   : > { %v347_v39 = vadd.f32 %v346_v37, %v345_v36 }
  0xbc   : > { %v348_v40 = vrot.slane %v347_v39, 2 }
  0xbe   : > { %v349_v42 = vadd.f32 %v348_v40, %v347_v39 }
  0xc0   : > { %v350_v43 = vrot.slane %v349_v42, 1 }
  0xc2   : > { %v351_v45 = vadd.f32 %v350_v43, %v349_v42 }
  0xc4   : > { %v359_v46 = vmul.f32 %v358_v44, %v351_v45 }
  0xc6   : > { %v360_v47 = vsub.f32 %v339_v33, %v359_v46  ;;  %v361_v48 = vsub.f32 %v341_v32, %v359_v46 }
  0xc8   : > { %v362_v49 = vmul.f32 %v360_v47, %v360_v47  ;;  %v363_v50 = vmul.f32 %v361_v48, %v361_v48 }
  0xca   : > { %v364_v51 = vsel %vm343_vm0, %v363_v50, 0.0 }
  0xcb   : > { %v365_v52 = vadd.f32 %v364_v51, %v362_v49 }
  0xcd   : > { %v366_v53 = vrot.slane %v365_v52, 4 }
  0xcf   : > { %v367_v54 = vadd.f32 %v366_v53, %v365_v52 }
  0xd1   : > { %v368_v55 = vrot.slane %v367_v54, 2 }
  0xd3   : > { %v369_v56 = vadd.f32 %v368_v55, %v367_v54 }
  0xd5   : > { %v370_v57 = vrot.slane %v369_v56, 1 }
  0xd7   : > { %v371_v58 = vadd.f32 %v370_v57, %v369_v56 }
  0xd9   : > { %v372_v59 = vmul.f32 %v371_v58, %v358_v44 }
  0xdb   : > { %v373_v60 = vadd.f32 1e-05, %v372_v59 }
  0xdd   : > { %564 = vrsqrt.f32 %v373_v60  ;;  %vm380_vm3 = vweird.f32 %v373_v60 }
  0xe3   : > { %v565_v61 = vpop.eup %564 }
  0xe4   : > { %v375_v62 = vmul.f32 %v565_v61, %v373_v60  ;;  %vm381_vm2 = vweird.f32 %v565_v61 }
  0xe5   : > { %vm382_vm4 = vmor %vm380_vm3, %vm381_vm2 }
  0xe6   : > { %v376_v63 = vmul.f32 %v565_v61, %v375_v62 }
  0xe8   : > { %v377_v0 = vmul.f32 0.5, %v376_v63 }
  0xea   : > { %v378_v1 = vsub.f32 1.5, %v377_v0 }
  0xec   : > { %v379_v2 = vmul.f32 %v565_v61, %v378_v1 }
  0xee   : > { %v383_v3 = vsel %vm382_vm4, %v565_v61, %v379_v2 }
  0xef   : > { %v384_v4 = vmul.f32 %v383_v3, %v360_v47  ;;  %v385_v5 = vmul.f32 %v383_v3, %v361_v48 }
  0xf1   : > { %vm386_vm5 = vcmp.ge.f32.partialorder %v384_v4, 0.0  ;;  %vm387_vm6 = vcmp.ge.f32.partialorder %v385_v5, 0.0  ;;  %v388_v6 = vmul.f32 0.2, %v384_v4  ;;  %v389_v7 = vmul.f32 0.2, %v385_v5 }
  0xf3   : > { %v390_v8 = vsel %vm386_vm5, %v384_v4, %v388_v6  ;;  %v391_v9 = vsel %vm387_vm6, %v385_v5, %v389_v7 }
  0xf4   : > { %392 = vst [vmem:[%s170_s29] sm:$0xff] %v390_v8 }
  0xf5   : > { %393 = vst [vmem:[%s170_s29 + $0x8] sm:$0x1] %v391_v9 }
  0xf6 PF: > { %s13_s12 = sadd.s32 1, %s572_s12  }
  0xf7   : > { %p10_p4 = scmp.ge.s32.totalorder %s13_s12, 4  }
  0xf9   :  { %12 = sbr.rel (!%p10_p4) target bundleno = 1 (0x1), region = 62 }

// kernel: cycle_d_forward.8
= control target key start
LH: loop header
LB: loop body
LE: loop exit
PB: predicated region body
PF: predicated region fallthrough
CT: control target
= control target key end

     0   :  { %s850_s12 = smov 0   ;;  %s974_s0 = inlined_call_operand.vmem [shape: bf16[2,16,512], index: 0, kind: input, shape index: {}]   ;;  %s975_s1 = inlined_call_operand.vmem [shape: bf16[512,128], index: 1, kind: input, shape index: {}]   ;;  %s976_s2 = inlined_call_operand.vmem [shape: f32[1,128], index: 2, kind: input, shape index: {}]   ;;  %s977_s3 = inlined_call_operand.vmem [shape: f32[2,16,128], index: 3, kind: output, shape index: {}]  }
   0x1 LB: > { %s614_s13 = sadd.s32 4294967295, %s827_s12   ;;  %p618_p0 = scmp.ge.s32.totalorder %s827_s12, 1  ;;  %s827_s12 = sphi %s850_s12, %s13_s12  }
   0x2   : > { %p137_p1 = scmp.lt.s32.totalorder %s827_s12, 3 }
   0x4   : > { %p138_p2 = pnand %p618_p0, %p137_p1 }
   0x5   : > { %p161_p3 = scmp.lt.s32.totalorder (!%p138_p2), %s614_s13, 1 }
   0x6   : > { %141 = sbr.rel (%p138_p2) target bundleno = 252 (0xfc), region = 32 }
   0xb   : > { %v782_v0 = vld [vmem:[%s975_s1 + $0x38] sm:$0xff]  ;;  %v781_v4 = vld [vmem:[%s975_s1 + $0x30] sm:$0xff]  ;;  %v780_v8 = vld [vmem:[%s975_s1 + $0x28] sm:$0xff]  ;;  %s979_s13 = smov (!%p161_p3, %s614_s13), 1  ;;  %v829_v48 = vmov 16.0  }
   0xc   : > { %v790_v1 = vld [vmem:[%s975_s1 + $0x78] sm:$0xff]  ;;  %455 = vmatpush.bf16.msra.mxu0 %v782_v0  ;;  %v789_v5 = vld [vmem:[%s975_s1 + $0x70] sm:$0xff]  ;;  %v788_v9 = vld [vmem:[%s975_s1 + $0x68] sm:$0xff]  ;;  %s769_s10 = sshll.u32 %s979_s13, 5  ;;  %817 = vrcp.f32 %v829_v48  ;;  %s770_s7 = sshll.u32 %s979_s13, 4 }
   0xd   : > { %v798_v2 = vld [vmem:[%s975_s1 + $0xb8] sm:$0xff]  ;;  %469 = vmatpush.bf16.msra.mxu1 %v790_v1  ;;  %v797_v6 = vld [vmem:[%s975_s1 + $0xb0] sm:$0xff]  ;;  %v796_v10 = vld [vmem:[%s975_s1 + $0xa8] sm:$0xff]  ;;  %s165_s19 = scalar_lea.vmem %s974_s0, %s769_s10  ;;  %s170_s10 = scalar_lea.vmem %s977_s3, %s770_s7 }
   0xe   : > { %v806_v3 = vld [vmem:[%s975_s1 + $0xf8] sm:$0xff]  ;;  %483 = vmatpush.bf16.msra.mxu2 %v798_v2  ;;  %v805_v7 = vld [vmem:[%s975_s1 + $0xf0] sm:$0xff]  ;;  %v804_v11 = vld [vmem:[%s975_s1 + $0xe8] sm:$0xff] }
   0xf   : > { %497 = vmatpush.bf16.msra.mxu3 %v806_v3  ;;  %v779_v12 = vld [vmem:[%s975_s1 + $0x20] sm:$0xff]  ;;  %v778_v16 = vld [vmem:[%s975_s1 + $0x18] sm:$0xff]  ;;  %v777_v20 = vld [vmem:[%s975_s1 + $0x10] sm:$0xff] }
  0x10   : > { %456 = vmatpush.bf16.msra.mxu0 %v781_v4  ;;  %v787_v13 = vld [vmem:[%s975_s1 + $0x60] sm:$0xff]  ;;  %v786_v17 = vld [vmem:[%s975_s1 + $0x58] sm:$0xff]  ;;  %v785_v21 = vld [vmem:[%s975_s1 + $0x50] sm:$0xff] }
  0x11   : > { %470 = vmatpush.bf16.msra.mxu1 %v789_v5  ;;  %v795_v14 = vld [vmem:[%s975_s1 + $0xa0] sm:$0xff]  ;;  %v794_v18 = vld [vmem:[%s975_s1 + $0x98] sm:$0xff]  ;;  %v793_v22 = vld [vmem:[%s975_s1 + $0x90] sm:$0xff] }
  0x12   : > { %484 = vmatpush.bf16.msra.mxu2 %v797_v6  ;;  %v803_v15 = vld [vmem:[%s975_s1 + $0xe0] sm:$0xff]  ;;  %v802_v19 = vld [vmem:[%s975_s1 + $0xd8] sm:$0xff]  ;;  %v801_v23 = vld [vmem:[%s975_s1 + $0xd0] sm:$0xff]  ;;  %v818_v54 = vpop.eup %817 }
  0x13   : > { %498 = vmatpush.bf16.msra.mxu3 %v805_v7  ;;  %v776_v24 = vld [vmem:[%s975_s1 + $0x8] sm:$0xff]  ;;  %v775_v28 = vld [vmem:[%s975_s1] sm:$0xff]  ;;  %v773_v33 = vld [vmem:[%s165_s19 + $0xc] sm:$0xf0]  ;;  %v519_v59 = vmul.f32 16.0, %v818_v54  ;;  %vm523_vm0 = vweird.f32 %v818_v54 }
  0x14   : > { %457 = vmatpush.bf16.msra.mxu0 %v780_v8  ;;  %v784_v25 = vld [vmem:[%s975_s1 + $0x48] sm:$0xff]  ;;  %v783_v29 = vld [vmem:[%s975_s1 + $0x40] sm:$0xff]  ;;  %v627_v35 = vld [vmem:[%s165_s19 + $0x10] sm:$0xf0] }
  0x15   : > { %471 = vmatpush.bf16.msra.mxu1 %v788_v9  ;;  %v792_v26 = vld [vmem:[%s975_s1 + $0x88] sm:$0xff]  ;;  %v791_v30 = vld [vmem:[%s975_s1 + $0x80] sm:$0xff]  ;;  %v774_v37 = vld [vmem:[%s165_s19 + $0x14] sm:$0xf0]  ;;  %v520_v0 = vsub.f32 1.0, %v519_v59 }
  0x16   : > { %485 = vmatpush.bf16.msra.mxu2 %v796_v10  ;;  %v800_v27 = vld [vmem:[%s975_s1 + $0xc8] sm:$0xff]  ;;  %v799_v31 = vld [vmem:[%s975_s1 + $0xc0] sm:$0xff]  ;;  %v635_v39 = vld [vmem:[%s165_s19 + $0x18] sm:$0xf0] }
  0x17   : > { %499 = vmatpush.bf16.msra.mxu3 %v804_v11  ;;  %v625_v32 = vld [vmem:[%s165_s19] sm:$0xf]  ;;  %v771_v34 = vld [vmem:[%s165_s19 + $0x4] sm:$0xf]  ;;  %v633_v36 = vld [vmem:[%s165_s19 + $0x8] sm:$0xf]  ;;  %v521_v3 = vmul.f32 %v818_v54, %v520_v0 }
  0x18   : > { %458 = vmatpush.bf16.msra.mxu0 %v779_v12  ;;  %v772_v38 = vld [vmem:[%s165_s19 + $0xc] sm:$0xf]  ;;  %v626_v40 = vor.u32 %v773_v33, %v625_v32  ;;  %v630_v41 = vor.u32 %v771_v34, %v627_v35  ;;  %v634_v42 = vor.u32 %v774_v37, %v633_v36  ;;  %v816_v45 = vld [vmem:[%s976_s2] ss:$0 sm:$0xff] }
  0x19   : > { %472 = vmatpush.bf16.msra.mxu1 %v787_v13  ;;  %v638_v43 = vor.u32 %v772_v38, %v635_v39  ;;  %v522_v6 = vadd.f32 %v818_v54, %v521_v3 }
  0x1a   : > { %486 = vmatpush.bf16.msra.mxu2 %v795_v14 }
  0x1b   : > { %500 = vmatpush.bf16.msra.mxu3 %v803_v15  ;;  %v524_v9 = vsel %vm523_vm0, %v818_v54, %v522_v6 }
  0x1c   : > { %459 = vmatpush.bf16.msra.mxu0 %v778_v16 }
  0x1d   : > { %473 = vmatpush.bf16.msra.mxu1 %v786_v17 }
  0x1e   : > { %487 = vmatpush.bf16.msra.mxu2 %v794_v18 }
  0x1f   : > { %501 = vmatpush.bf16.msra.mxu3 %v802_v19 }
  0x20   : > { %460 = vmatpush.bf16.msra.mxu0 %v777_v20 }
  0x21   : > { %474 = vmatpush.bf16.msra.mxu1 %v785_v21 }
  0x22   : > { %488 = vmatpush.bf16.msra.mxu2 %v793_v22 }
  0x23   : > { %502 = vmatpush.bf16.msra.mxu3 %v801_v23 }
  0x24   : > { %461 = vmatpush.bf16.msra.mxu0 %v776_v24 }
  0x25   : > { %475 = vmatpush.bf16.msra.mxu1 %v784_v25 }
  0x26   : > { %489 = vmatpush.bf16.msra.mxu2 %v792_v26 }
  0x27   : > { %503 = vmatpush.bf16.msra.mxu3 %v800_v27 }
  0x28   : > { %462 = vmatpush.bf16.msra.mxu0 %v775_v28 }
  0x29   : > { %476 = vmatpush.bf16.msra.mxu1 %v783_v29 }
  0x2a   : > { %490 = vmatpush.bf16.msra.mxu2 %v791_v30 }
  0x2b   : > { %504 = vmatpush.bf16.msra.mxu3 %v799_v31  ;;  %463 = vmatmul.bf16.vlgmr.msra.gmra.mxu0 %v626_v40 }
  0x2c   : > { %477 = vmatmul.bf16.vlgmr.msra.gmra.mxu1 %v630_v41 }
  0x2d   : > { %491 = vmatmul.bf16.vlgmr.msra.gmra.mxu2 %v634_v42 }
  0x2e   : > { %505 = vmatmul.bf16.vlgmr.msra.gmra.mxu3 %v638_v43 }
  0xa8   : > { %v464_v44 = vpop.f32.mrf.mxu0 }
  0xa9   : > { %v478_v46 = vpop.f32.mrf.mxu1  ;;  %v465_v47 = vadd.f32 %v816_v45, %v464_v44 }
  0xab   : > { %v479_v52 = vadd.f32 %v478_v46, %v465_v47 }
  0xb0   : > { %v492_v49 = vpop.f32.mrf.mxu2  ;;  %v466_v51 = vpop.f32.mrf.mxu0 }
  0xb1   : > { %v506_v50 = vpop.f32.mrf.mxu3  ;;  %v467_v53 = vadd.f32 %v816_v45, %v466_v51  ;;  %v480_v55 = vpop.f32.mrf.mxu1  ;;  %v493_v56 = vadd.f32 %v492_v49, %v479_v52 }
  0xb3   : > { %v481_v57 = vadd.f32 %v480_v55, %v467_v53  ;;  %v507_v62 = vadd.f32 %v506_v50, %v493_v56 }
  0xb8   : > { %v494_v58 = vpop.f32.mrf.mxu2 }
  0xb9   : > { %v495_v60 = vadd.f32 %v494_v58, %v481_v57  ;;  %v508_v61 = vpop.f32.mrf.mxu3 }
  0xbb   : > { %v509_v63 = vadd.f32 %v508_v61, %v495_v60 }
  0xbd   : > { %v511_v1 = vadd.f32 %v509_v63, %v507_v62 }
  0xbf   : > { %v512_v2 = vrot.slane %v511_v1, 4 }
  0xc1   : > { %v513_v4 = vadd.f32 %v512_v2, %v511_v1 }
  0xc3   : > { %v514_v5 = vrot.slane %v513_v4, 2 }
  0xc5   : > { %v515_v7 = vadd.f32 %v514_v5, %v513_v4 }
  0xc7   : > { %v516_v8 = vrot.slane %v515_v7, 1 }
  0xc9   : > { %v517_v10 = vadd.f32 %v516_v8, %v515_v7 }
  0xcb   : > { %v525_v11 = vmul.f32 %v524_v9, %v517_v10 }
  0xcd   : > { %v526_v12 = vsub.f32 %v507_v62, %v525_v11  ;;  %v527_v13 = vsub.f32 %v509_v63, %v525_v11 }
  0xcf   : > { %v528_v14 = vmul.f32 %v526_v12, %v526_v12  ;;  %v529_v15 = vmul.f32 %v527_v13, %v527_v13 }
  0xd1   : > { %v530_v16 = vadd.f32 %v529_v15, %v528_v14 }
  0xd3   : > { %v531_v17 = vrot.slane %v530_v16, 4 }
  0xd5   : > { %v532_v18 = vadd.f32 %v531_v17, %v530_v16 }
  0xd7   : > { %v533_v19 = vrot.slane %v532_v18, 2 }
  0xd9   : > { %v534_v20 = vadd.f32 %v533_v19, %v532_v18 }
  0xdb   : > { %v535_v21 = vrot.slane %v534_v20, 1 }
  0xdd   : > { %v536_v22 = vadd.f32 %v535_v21, %v534_v20 }
  0xdf   : > { %v537_v23 = vmul.f32 %v536_v22, %v524_v9 }
  0xe1   : > { %v538_v24 = vadd.f32 1e-05, %v537_v23 }
  0xe3   : > { %819 = vrsqrt.f32 %v538_v24  ;;  %vm545_vm2 = vweird.f32 %v538_v24 }
  0xe9   : > { %v820_v25 = vpop.eup %819 }
  0xea   : > { %v540_v26 = vmul.f32 %v820_v25, %v538_v24  ;;  %vm546_vm1 = vweird.f32 %v820_v25 }
  0xeb   : > { %vm547_vm3 = vmor %vm545_vm2, %vm546_vm1 }
  0xec   : > { %v541_v27 = vmul.f32 %v820_v25, %v540_v26 }
  0xee   : > { %v542_v28 = vmul.f32 0.5, %v541_v27 }
  0xf0   : > { %v543_v29 = vsub.f32 1.5, %v542_v28 }
  0xf2   : > { %v544_v30 = vmul.f32 %v820_v25, %v543_v29 }
  0xf4   : > { %v548_v31 = vsel %vm547_vm3, %v820_v25, %v544_v30 }
  0xf5   : > { %v549_v32 = vmul.f32 %v548_v31, %v526_v12  ;;  %v550_v33 = vmul.f32 %v548_v31, %v527_v13 }
  0xf7   : > { %vm551_vm4 = vcmp.ge.f32.partialorder %v549_v32, 0.0  ;;  %vm552_vm5 = vcmp.ge.f32.partialorder %v550_v33, 0.0  ;;  %v553_v34 = vmul.f32 0.2, %v549_v32  ;;  %v554_v35 = vmul.f32 0.2, %v550_v33 }
  0xf9   : > { %v555_v36 = vsel %vm551_vm4, %v549_v32, %v553_v34  ;;  %v556_v37 = vsel %vm552_vm5, %v550_v33, %v554_v35 }
  0xfa   : > { %557 = vst [vmem:[%s170_s10] sm:$0xff] %v555_v36 }
  0xfb   : > { %558 = vst [vmem:[%s170_s10 + $0x8] sm:$0xff] %v556_v37 }
  0xfc PF: > { %s13_s12 = sadd.s32 1, %s827_s12  }
  0xfd   : > { %p10_p4 = scmp.ge.s32.totalorder %s13_s12, 4  }
  0xff   :  { %12 = sbr.rel (!%p10_p4) target bundleno = 1 (0x1), region = 62 }

// kernel: cycle_d_forward.9
= control target key start
LH: loop header
LB: loop body
LE: loop exit
PB: predicated region body
PF: predicated region fallthrough
CT: control target
= control target key end

     0   :  { %s2680_s1 = inlined_call_operand.vmem [shape: bf16[1024,128], index: 1, kind: input, shape index: {}]   ;;  %s2681_s2 = inlined_call_operand.vmem [shape: f32[1,128], index: 2, kind: input, shape index: {}]   ;;  %s2682_s0 = inlined_call_operand.vmem [shape: bf16[128,1024], index: 0, kind: input, shape index: {}]   ;;  %s2683_s3 = inlined_call_operand.vmem [shape: f32[128,128], index: 3, kind: output, shape index: {}]  }
   0x1   :  { %v1909_v0 = vld [vmem:[%s2680_s1 + $0x38] sm:$0xff]  ;;  %v1908_v4 = vld [vmem:[%s2680_s1 + $0x30] sm:$0xff]  ;;  %v1907_v8 = vld [vmem:[%s2680_s1 + $0x28] sm:$0xff] }
   0x2   :  { %v1917_v1 = vld [vmem:[%s2680_s1 + $0x78] sm:$0xff]  ;;  %914 = vmatpush.bf16.msra.mxu0 %v1909_v0  ;;  %v1916_v5 = vld [vmem:[%s2680_s1 + $0x70] sm:$0xff]  ;;  %v1915_v9 = vld [vmem:[%s2680_s1 + $0x68] sm:$0xff] }
   0x3   :  { %v1925_v2 = vld [vmem:[%s2680_s1 + $0xb8] sm:$0xff]  ;;  %963 = vmatpush.bf16.msra.mxu1 %v1917_v1  ;;  %v1924_v6 = vld [vmem:[%s2680_s1 + $0xb0] sm:$0xff]  ;;  %v1923_v10 = vld [vmem:[%s2680_s1 + $0xa8] sm:$0xff] }
   0x4   :  { %v1933_v3 = vld [vmem:[%s2680_s1 + $0xf8] sm:$0xff]  ;;  %1012 = vmatpush.bf16.msra.mxu2 %v1925_v2  ;;  %v1932_v7 = vld [vmem:[%s2680_s1 + $0xf0] sm:$0xff]  ;;  %v1931_v11 = vld [vmem:[%s2680_s1 + $0xe8] sm:$0xff] }
   0x5   :  { %1061 = vmatpush.bf16.msra.mxu3 %v1933_v3  ;;  %v1906_v12 = vld [vmem:[%s2680_s1 + $0x20] sm:$0xff]  ;;  %v1905_v16 = vld [vmem:[%s2680_s1 + $0x18] sm:$0xff]  ;;  %v1904_v20 = vld [vmem:[%s2680_s1 + $0x10] sm:$0xff] }
   0x6   :  { %915 = vmatpush.bf16.msra.mxu0 %v1908_v4  ;;  %v1914_v13 = vld [vmem:[%s2680_s1 + $0x60] sm:$0xff]  ;;  %v1913_v17 = vld [vmem:[%s2680_s1 + $0x58] sm:$0xff]  ;;  %v1912_v21 = vld [vmem:[%s2680_s1 + $0x50] sm:$0xff] }
   0x7   :  { %964 = vmatpush.bf16.msra.mxu1 %v1916_v5  ;;  %v1922_v14 = vld [vmem:[%s2680_s1 + $0xa0] sm:$0xff]  ;;  %v1921_v18 = vld [vmem:[%s2680_s1 + $0x98] sm:$0xff]  ;;  %v1920_v22 = vld [vmem:[%s2680_s1 + $0x90] sm:$0xff] }
   0x8   :  { %1013 = vmatpush.bf16.msra.mxu2 %v1924_v6  ;;  %v1930_v15 = vld [vmem:[%s2680_s1 + $0xe0] sm:$0xff]  ;;  %v1929_v19 = vld [vmem:[%s2680_s1 + $0xd8] sm:$0xff]  ;;  %v1928_v23 = vld [vmem:[%s2680_s1 + $0xd0] sm:$0xff] }
   0x9   :  { %1062 = vmatpush.bf16.msra.mxu3 %v1932_v7  ;;  %v1903_v24 = vld [vmem:[%s2680_s1 + $0x8] sm:$0xff]  ;;  %v1902_v28 = vld [vmem:[%s2680_s1] sm:$0xff]  ;;  %v1957_v40 = vld [vmem:[%s2680_s1 + $0x1b8] sm:$0xff] }
   0xa   :  { %916 = vmatpush.bf16.msra.mxu0 %v1907_v8  ;;  %v1911_v25 = vld [vmem:[%s2680_s1 + $0x48] sm:$0xff]  ;;  %v1910_v29 = vld [vmem:[%s2680_s1 + $0x40] sm:$0xff]  ;;  %v1941_v41 = vld [vmem:[%s2680_s1 + $0x138] sm:$0xff] }
   0xb   :  { %965 = vmatpush.bf16.msra.mxu1 %v1915_v9  ;;  %v1919_v26 = vld [vmem:[%s2680_s1 + $0x88] sm:$0xff]  ;;  %v1918_v30 = vld [vmem:[%s2680_s1 + $0x80] sm:$0xff]  ;;  %v1965_v46 = vld [vmem:[%s2680_s1 + $0x1f8] sm:$0xff] }
   0xc   :  { %1014 = vmatpush.bf16.msra.mxu2 %v1923_v10  ;;  %v1927_v27 = vld [vmem:[%s2680_s1 + $0xc8] sm:$0xff]  ;;  %v1926_v31 = vld [vmem:[%s2680_s1 + $0xc0] sm:$0xff]  ;;  %v1949_v47 = vld [vmem:[%s2680_s1 + $0x178] sm:$0xff] }
   0xd   :  { %1063 = vmatpush.bf16.msra.mxu3 %v1931_v11  ;;  %v1328_v32 = vld [vmem:[%s2682_s0] sm:$0xf]  ;;  %v1838_v34 = vld [vmem:[%s2682_s0 + $0x4] sm:$0xf]  ;;  %v1336_v36 = vld [vmem:[%s2682_s0 + $0x8] sm:$0xf] }
   0xe   :  { %917 = vmatpush.bf16.msra.mxu0 %v1906_v12  ;;  %v1842_v33 = vld [vmem:[%s2682_s0 + $0x1c] sm:$0xf0]  ;;  %v1330_v35 = vld [vmem:[%s2682_s0 + $0x20] sm:$0xf0]  ;;  %v1843_v37 = vld [vmem:[%s2682_s0 + $0x24] sm:$0xf0] }
   0xf   :  { %966 = vmatpush.bf16.msra.mxu1 %v1914_v13  ;;  %v1839_v38 = vld [vmem:[%s2682_s0 + $0xc] sm:$0xf]  ;;  %v1329_v42 = vor.u32 %v1842_v33, %v1328_v32  ;;  %v1333_v43 = vor.u32 %v1838_v34, %v1330_v35  ;;  %v1337_v44 = vor.u32 %v1843_v37, %v1336_v36  ;;  %v1956_v48 = vld [vmem:[%s2680_s1 + $0x1b0] sm:$0xff]  ;;  %v1360_v56 = vld [vmem:[%s2682_s0 + $0x40] sm:$0xf] }
  0x10   :  { %1015 = vmatpush.bf16.msra.mxu2 %v1922_v14  ;;  %v1338_v39 = vld [vmem:[%s2682_s0 + $0x28] sm:$0xf0]  ;;  %v1940_v49 = vld [vmem:[%s2680_s1 + $0x130] sm:$0xff]  ;;  %v1850_v57 = vld [vmem:[%s2682_s0 + $0x5c] sm:$0xf0] }
  0x11   :  { %1064 = vmatpush.bf16.msra.mxu3 %v1930_v15  ;;  %v1341_v45 = vor.u32 %v1839_v38, %v1338_v39  ;;  %v1964_v50 = vld [vmem:[%s2680_s1 + $0x1f0] sm:$0xff]  ;;  %v1955_v52 = vld [vmem:[%s2680_s1 + $0x1a8] sm:$0xff]  ;;  %v1846_v58 = vld [vmem:[%s2682_s0 + $0x44] sm:$0xf]  ;;  %v1361_v0 = vor.u32 %v1850_v57, %v1360_v56 }
  0x12   :  { %918 = vmatpush.bf16.msra.mxu0 %v1905_v16  ;;  %v1948_v51 = vld [vmem:[%s2680_s1 + $0x170] sm:$0xff]  ;;  %v1939_v53 = vld [vmem:[%s2680_s1 + $0x128] sm:$0xff]  ;;  %v1362_v59 = vld [vmem:[%s2682_s0 + $0x60] sm:$0xf0] }
  0x13   :  { %967 = vmatpush.bf16.msra.mxu1 %v1913_v17  ;;  %v1963_v54 = vld [vmem:[%s2680_s1 + $0x1e8] sm:$0xff]  ;;  %v1365_v1 = vor.u32 %v1846_v58, %v1362_v59  ;;  %v1954_v4 = vld [vmem:[%s2680_s1 + $0x1a0] sm:$0xff]  ;;  %v1952_v36 = vld [vmem:[%s2680_s1 + $0x190] sm:$0xff] }
  0x14   :  { %1016 = vmatpush.bf16.msra.mxu2 %v1921_v18  ;;  %v1947_v55 = vld [vmem:[%s2680_s1 + $0x168] sm:$0xff]  ;;  %v1938_v5 = vld [vmem:[%s2680_s1 + $0x120] sm:$0xff]  ;;  %v1936_v37 = vld [vmem:[%s2680_s1 + $0x110] sm:$0xff] }
  0x15   :  { %1065 = vmatpush.bf16.msra.mxu3 %v1929_v19  ;;  %v1368_v60 = vld [vmem:[%s2682_s0 + $0x48] sm:$0xf]  ;;  %v1847_v62 = vld [vmem:[%s2682_s0 + $0x4c] sm:$0xf]  ;;  %v1962_v6 = vld [vmem:[%s2680_s1 + $0x1e0] sm:$0xff] }
  0x16   :  { %919 = vmatpush.bf16.msra.mxu0 %v1904_v20  ;;  %v1851_v61 = vld [vmem:[%s2682_s0 + $0x64] sm:$0xf0]  ;;  %v1370_v63 = vld [vmem:[%s2682_s0 + $0x68] sm:$0xf0]  ;;  %v1946_v7 = vld [vmem:[%s2680_s1 + $0x160] sm:$0xff] }
  0x17   :  { %968 = vmatpush.bf16.msra.mxu1 %v1912_v21  ;;  %v1369_v2 = vor.u32 %v1851_v61, %v1368_v60  ;;  %v1373_v3 = vor.u32 %v1847_v62, %v1370_v63  ;;  %v1392_v8 = vld [vmem:[%s2682_s0 + $0x80] sm:$0xf]  ;;  %v1854_v10 = vld [vmem:[%s2682_s0 + $0x84] sm:$0xf]  ;;  %v1400_v12 = vld [vmem:[%s2682_s0 + $0x88] sm:$0xf] }
  0x18   :  { %1017 = vmatpush.bf16.msra.mxu2 %v1920_v22  ;;  %v1858_v9 = vld [vmem:[%s2682_s0 + $0x9c] sm:$0xf0]  ;;  %v1394_v11 = vld [vmem:[%s2682_s0 + $0xa0] sm:$0xf0]  ;;  %v1859_v13 = vld [vmem:[%s2682_s0 + $0xa4] sm:$0xf0] }
  0x19   :  { %1066 = vmatpush.bf16.msra.mxu3 %v1928_v23  ;;  %v1855_v14 = vld [vmem:[%s2682_s0 + $0x8c] sm:$0xf]  ;;  %v1393_v16 = vor.u32 %v1858_v9, %v1392_v8  ;;  %v1397_v17 = vor.u32 %v1854_v10, %v1394_v11  ;;  %v1401_v18 = vor.u32 %v1859_v13, %v1400_v12  ;;  %v1953_v20 = vld [vmem:[%s2680_s1 + $0x198] sm:$0xff]  ;;  %v1960_v38 = vld [vmem:[%s2680_s1 + $0x1d0] sm:$0xff] }
  0x1a   :  { %920 = vmatpush.bf16.msra.mxu0 %v1903_v24  ;;  %v1402_v15 = vld [vmem:[%s2682_s0 + $0xa8] sm:$0xf0]  ;;  %v1937_v21 = vld [vmem:[%s2680_s1 + $0x118] sm:$0xff]  ;;  %v1424_v24 = vld [vmem:[%s2682_s0 + $0xc0] sm:$0xf] }
  0x1b   :  { %969 = vmatpush.bf16.msra.mxu1 %v1911_v25  ;;  %v1405_v19 = vor.u32 %v1855_v14, %v1402_v15  ;;  %v1961_v22 = vld [vmem:[%s2680_s1 + $0x1d8] sm:$0xff]  ;;  %v1866_v25 = vld [vmem:[%s2682_s0 + $0xdc] sm:$0xf0]  ;;  %v1944_v39 = vld [vmem:[%s2680_s1 + $0x150] sm:$0xff] }
  0x1c   :  { %1018 = vmatpush.bf16.msra.mxu2 %v1919_v26  ;;  %v1945_v23 = vld [vmem:[%s2680_s1 + $0x158] sm:$0xff]  ;;  %v1862_v26 = vld [vmem:[%s2682_s0 + $0xc4] sm:$0xf]  ;;  %v1425_v32 = vor.u32 %v1866_v25, %v1424_v24  ;;  %v1488_v56 = vld [vmem:[%s2682_s0 + $0x140] sm:$0xf] }
  0x1d   :  { %1067 = vmatpush.bf16.msra.mxu3 %v1927_v27  ;;  %v1426_v27 = vld [vmem:[%s2682_s0 + $0xe0] sm:$0xf0]  ;;  %v1882_v57 = vld [vmem:[%s2682_s0 + $0x15c] sm:$0xf0]  ;;  %v1496_v60 = vld [vmem:[%s2682_s0 + $0x148] sm:$0xf] }
  0x1e   :  { %921 = vmatpush.bf16.msra.mxu0 %v1902_v28  ;;  %v1432_v28 = vld [vmem:[%s2682_s0 + $0xc8] sm:$0xf]  ;;  %v1429_v33 = vor.u32 %v1862_v26, %v1426_v27  ;;  %v1878_v58 = vld [vmem:[%s2682_s0 + $0x144] sm:$0xf]  ;;  %v1879_v62 = vld [vmem:[%s2682_s0 + $0x14c] sm:$0xf] }
  0x1f   :  { %970 = vmatpush.bf16.msra.mxu1 %v1910_v29  ;;  %v1867_v29 = vld [vmem:[%s2682_s0 + $0xe4] sm:$0xf0]  ;;  %v1490_v59 = vld [vmem:[%s2682_s0 + $0x160] sm:$0xf0]  ;;  %v1498_v63 = vld [vmem:[%s2682_s0 + $0x168] sm:$0xf0] }
  0x20   :  { %1019 = vmatpush.bf16.msra.mxu2 %v1918_v30  ;;  %v1863_v30 = vld [vmem:[%s2682_s0 + $0xcc] sm:$0xf]  ;;  %v1433_v34 = vor.u32 %v1867_v29, %v1432_v28  ;;  %v1883_v61 = vld [vmem:[%s2682_s0 + $0x164] sm:$0xf0]  ;;  %v1520_v8 = vld [vmem:[%s2682_s0 + $0x180] sm:$0xf] }
  0x21   :  { %1068 = vmatpush.bf16.msra.mxu3 %v1926_v31  ;;  %922 = vmatmul.bf16.vlgmr.msra.gmra.mxu0 %v1329_v42  ;;  %v1434_v31 = vld [vmem:[%s2682_s0 + $0xe8] sm:$0xf0]  ;;  %v1870_v42 = vld [vmem:[%s2682_s0 + $0x104] sm:$0xf]  ;;  %v1890_v9 = vld [vmem:[%s2682_s0 + $0x19c] sm:$0xf0] }
  0x22   :  { %1110 = vmatpush.bf16.msrb.mxu0 %v1941_v41  ;;  %971 = vmatmul.bf16.vlgmr.msra.gmra.mxu1 %v1333_v43  ;;  %v1437_v35 = vor.u32 %v1863_v30, %v1434_v31  ;;  %v1874_v41 = vld [vmem:[%s2682_s0 + $0x11c] sm:$0xf0]  ;;  %v1458_v43 = vld [vmem:[%s2682_s0 + $0x120] sm:$0xf0]  ;;  %v1528_v12 = vld [vmem:[%s2682_s0 + $0x188] sm:$0xf] }
  0x23   :  { %1020 = vmatmul.bf16.vlgmr.msra.gmra.mxu2 %v1337_v44  ;;  %1159 = vmatpush.bf16.msrb.mxu1 %v1949_v47  ;;  %v1464_v44 = vld [vmem:[%s2682_s0 + $0x108] sm:$0xf]  ;;  %v1466_v47 = vld [vmem:[%s2682_s0 + $0x128] sm:$0xf0]  ;;  %v1886_v10 = vld [vmem:[%s2682_s0 + $0x184] sm:$0xf] }
  0x24   :  { %1208 = vmatpush.bf16.msrb.mxu2 %v1957_v40  ;;  %1069 = vmatmul.bf16.vlgmr.msra.gmra.mxu3 %v1341_v45  ;;  %v1456_v40 = vld [vmem:[%s2682_s0 + $0x100] sm:$0xf]  ;;  %v1875_v45 = vld [vmem:[%s2682_s0 + $0x124] sm:$0xf0]  ;;  %v1522_v11 = vld [vmem:[%s2682_s0 + $0x1a0] sm:$0xf0] }
  0x25   :  { %1257 = vmatpush.bf16.msrb.mxu3 %v1965_v46  ;;  %v1871_v46 = vld [vmem:[%s2682_s0 + $0x10c] sm:$0xf]  ;;  %v1891_v13 = vld [vmem:[%s2682_s0 + $0x1a4] sm:$0xf0] }
  0x26   :  { %1111 = vmatpush.bf16.msrb.mxu0 %v1940_v49  ;;  %v1461_v49 = vor.u32 %v1870_v42, %v1458_v43  ;;  %v1887_v14 = vld [vmem:[%s2682_s0 + $0x18c] sm:$0xf]  ;;  %v1560_v24 = vld [vmem:[%s2682_s0 + $0x1c8] sm:$0xf] }
  0x27   :  { %1160 = vmatpush.bf16.msrb.mxu1 %v1948_v51  ;;  %v1469_v51 = vor.u32 %v1871_v46, %v1466_v47  ;;  %v1530_v15 = vld [vmem:[%s2682_s0 + $0x1a8] sm:$0xf0]  ;;  %v1899_v25 = vld [vmem:[%s2682_s0 + $0x1e4] sm:$0xf0] }
  0x28   :  { %1209 = vmatpush.bf16.msrb.mxu2 %v1956_v48  ;;  %v1457_v48 = vor.u32 %v1874_v41, %v1456_v40  ;;  %v1895_v26 = vld [vmem:[%s2682_s0 + $0x1cc] sm:$0xf]  ;;  %v1561_v30 = vor.u32 %v1899_v25, %v1560_v24  ;;  %v1354_v40 = vld [vmem:[%s2682_s0 + $0x38] sm:$0xf0]  ;;  %v1410_v24 = vld [vmem:[%s2682_s0 + $0xb0] sm:$0xf0] }
  0x29   :  { %1258 = vmatpush.bf16.msrb.mxu3 %v1964_v50  ;;  %v1465_v50 = vor.u32 %v1875_v45, %v1464_v44  ;;  %v1562_v27 = vld [vmem:[%s2682_s0 + $0x1e8] sm:$0xf0]  ;;  %v1416_v25 = vld [vmem:[%s2682_s0 + $0x98] sm:$0xf] }
  0x2a   :  { %1112 = vmatpush.bf16.msrb.mxu0 %v1939_v53  ;;  %v1935_v53 = vld [vmem:[%s2680_s1 + $0x108] sm:$0xff]  ;;  %v1565_v31 = vor.u32 %v1895_v26, %v1562_v27  ;;  %v1861_v26 = vld [vmem:[%s2682_s0 + $0xb4] sm:$0xf0]  ;;  %v1857_v27 = vld [vmem:[%s2682_s0 + $0x9c] sm:$0xf] }
  0x2b   :  { %1161 = vmatpush.bf16.msrb.mxu1 %v1947_v55  ;;  %v1943_v55 = vld [vmem:[%s2680_s1 + $0x148] sm:$0xff] }
  0x2c   :  { %1210 = vmatpush.bf16.msrb.mxu2 %v1955_v52  ;;  %v1951_v52 = vld [vmem:[%s2680_s1 + $0x188] sm:$0xff] }
  0x2d   :  { %1259 = vmatpush.bf16.msrb.mxu3 %v1963_v54  ;;  %v1959_v54 = vld [vmem:[%s2680_s1 + $0x1c8] sm:$0xff] }
  0x2e   :  { %1113 = vmatpush.bf16.msrb.mxu0 %v1938_v5  ;;  %v1934_v5 = vld [vmem:[%s2680_s1 + $0x100] sm:$0xff] }
  0x2f   :  { %1162 = vmatpush.bf16.msrb.mxu1 %v1946_v7  ;;  %v1942_v7 = vld [vmem:[%s2680_s1 + $0x140] sm:$0xff] }
  0x30   :  { %1211 = vmatpush.bf16.msrb.mxu2 %v1954_v4  ;;  %v1950_v4 = vld [vmem:[%s2680_s1 + $0x180] sm:$0xff] }
  0x31   :  { %927 = vmatmul.bf16.gmra.mxu0 %v1361_v0  ;;  %1260 = vmatpush.bf16.msrb.mxu3 %v1962_v6  ;;  %v1489_v0 = vor.u32 %v1882_v57, %v1488_v56  ;;  %v1958_v6 = vld [vmem:[%s2680_s1 + $0x1c0] sm:$0xff]  ;;  %v1376_v57 = vld [vmem:[%s2682_s0 + $0x50] sm:$0xf] }
  0x32   :  { %976 = vmatmul.bf16.gmra.mxu1 %v1365_v1  ;;  %1114 = vmatpush.bf16.msrb.mxu0 %v1937_v21  ;;  %v1493_v1 = vor.u32 %v1878_v58, %v1490_v59  ;;  %v1898_v21 = vld [vmem:[%s2682_s0 + $0x1dc] sm:$0xf0]  ;;  %v1852_v58 = vld [vmem:[%s2682_s0 + $0x6c] sm:$0xf0]  ;;  %v1848_v59 = vld [vmem:[%s2682_s0 + $0x54] sm:$0xf] }
  0x33   :  { %1025 = vmatmul.bf16.gmra.mxu2 %v1369_v2  ;;  %1163 = vmatpush.bf16.msrb.mxu1 %v1945_v23  ;;  %v1497_v2 = vor.u32 %v1883_v61, %v1496_v60  ;;  %v1554_v23 = vld [vmem:[%s2682_s0 + $0x1e0] sm:$0xf0]  ;;  %v1378_v60 = vld [vmem:[%s2682_s0 + $0x70] sm:$0xf0]  ;;  %v1384_v61 = vld [vmem:[%s2682_s0 + $0x58] sm:$0xf] }
  0x34   :  { %1074 = vmatmul.bf16.gmra.mxu3 %v1373_v3  ;;  %1212 = vmatpush.bf16.msrb.mxu2 %v1953_v20  ;;  %v1501_v3 = vor.u32 %v1879_v62, %v1498_v63  ;;  %v1552_v20 = vld [vmem:[%s2682_s0 + $0x1c0] sm:$0xf]  ;;  %v1853_v62 = vld [vmem:[%s2682_s0 + $0x74] sm:$0xf0]  ;;  %v1849_v63 = vld [vmem:[%s2682_s0 + $0x5c] sm:$0xf] }
  0x35   :  { %1261 = vmatpush.bf16.msrb.mxu3 %v1961_v22  ;;  %v1894_v22 = vld [vmem:[%s2682_s0 + $0x1c4] sm:$0xf]  ;;  %v1553_v28 = vor.u32 %v1898_v21, %v1552_v20  ;;  %v1408_v21 = vld [vmem:[%s2682_s0 + $0x90] sm:$0xf] }
  0x36   :  { %1115 = vmatpush.bf16.msrb.mxu0 %v1936_v37  ;;  %v1557_v29 = vor.u32 %v1894_v22, %v1554_v23  ;;  %v1352_v37 = vld [vmem:[%s2682_s0 + $0x18] sm:$0xf]  ;;  %v1860_v22 = vld [vmem:[%s2682_s0 + $0xac] sm:$0xf0]  ;;  %v1856_v23 = vld [vmem:[%s2682_s0 + $0x94] sm:$0xf] }
  0x37   :  { %1164 = vmatpush.bf16.msrb.mxu1 %v1944_v39  ;;  %v1841_v39 = vld [vmem:[%s2682_s0 + $0x1c] sm:$0xf] }
  0x38   :  { %1213 = vmatpush.bf16.msrb.mxu2 %v1952_v36  ;;  %v1346_v36 = vld [vmem:[%s2682_s0 + $0x30] sm:$0xf0]  ;;  %v1357_v46 = vor.u32 %v1841_v39, %v1354_v40 }
  0x39   :  { %1262 = vmatpush.bf16.msrb.mxu3 %v1960_v38  ;;  %v1845_v38 = vld [vmem:[%s2682_s0 + $0x34] sm:$0xf0] }
  0x3a   :  { %1116 = vmatpush.bf16.msrb.mxu0 %v1935_v53  ;;  %v1353_v45 = vor.u32 %v1845_v38, %v1352_v37  ;;  %v1417_v37 = vor.u32 %v1861_v26, %v1416_v25 }
  0x3b   :  { %1165 = vmatpush.bf16.msrb.mxu1 %v1943_v55 }
  0x3c   :  { %1214 = vmatpush.bf16.msrb.mxu2 %v1951_v52 }
  0x3d   :  { %1263 = vmatpush.bf16.msrb.mxu3 %v1959_v54 }
  0x3e   :  { %1117 = vmatpush.bf16.msrb.mxu0 %v1934_v5 }
  0x3f   :  { %1166 = vmatpush.bf16.msrb.mxu1 %v1942_v7 }
  0x40   :  { %1215 = vmatpush.bf16.msrb.mxu2 %v1950_v4  ;;  %v1381_v4 = vor.u32 %v1848_v59, %v1378_v60 }
  0x41   :  { %932 = vmatmul.bf16.gmra.mxu0 %v1393_v16  ;;  %1264 = vmatpush.bf16.msrb.mxu3 %v1958_v6  ;;  %v1521_v16 = vor.u32 %v1890_v9, %v1520_v8  ;;  %v1385_v8 = vor.u32 %v1853_v62, %v1384_v61 }
  0x42   :  { %981 = vmatmul.bf16.gmra.mxu1 %v1397_v17  ;;  %v1525_v17 = vor.u32 %v1886_v10, %v1522_v11 }
  0x43   :  { %1030 = vmatmul.bf16.gmra.mxu2 %v1401_v18  ;;  %v1529_v18 = vor.u32 %v1891_v13, %v1528_v12 }
  0x44   :  { %1079 = vmatmul.bf16.gmra.mxu3 %v1405_v19  ;;  %v1533_v19 = vor.u32 %v1887_v14, %v1530_v15 }
  0x51   :  { %937 = vmatmul.bf16.gmra.mxu0 %v1425_v32  ;;  %v2374_v32 = vld [vmem:[%s2681_s2] ss:$0 sm:$0xff] }
  0x52   :  { %986 = vmatmul.bf16.gmra.mxu1 %v1429_v33  ;;  %v1344_v33 = vld [vmem:[%s2682_s0 + $0x10] sm:$0xf] }
  0x53   :  { %1035 = vmatmul.bf16.gmra.mxu2 %v1433_v34  ;;  %v1844_v34 = vld [vmem:[%s2682_s0 + $0x2c] sm:$0xf0] }
  0x54   :  { %1084 = vmatmul.bf16.gmra.mxu3 %v1437_v35  ;;  %v1840_v35 = vld [vmem:[%s2682_s0 + $0x14] sm:$0xf]  ;;  %v1345_v41 = vor.u32 %v1844_v34, %v1344_v33  ;;  %v1413_v33 = vor.u32 %v1856_v23, %v1410_v24  ;;  %v1873_v23 = vld [vmem:[%s2682_s0 + $0x11c] sm:$0xf] }
  0x55   :  { %v1349_v42 = vor.u32 %v1840_v35, %v1346_v36  ;;  %v1482_v24 = vld [vmem:[%s2682_s0 + $0x138] sm:$0xf0] }
  0x61   :  { %942 = vmatmul.bf16.gmra.mxu0 %v1457_v48 }
  0x62   :  { %991 = vmatmul.bf16.gmra.mxu1 %v1461_v49 }
  0x63   :  { %1040 = vmatmul.bf16.gmra.mxu2 %v1465_v50 }
  0x64   :  { %1089 = vmatmul.bf16.gmra.mxu3 %v1469_v51 }
  0x71   :  { %947 = vmatmul.bf16.gmra.mxu0 %v1489_v0  ;;  %v1386_v0 = vld [vmem:[%s2682_s0 + $0x78] sm:$0xf0] }
  0x72   :  { %996 = vmatmul.bf16.gmra.mxu1 %v1493_v1  ;;  %v1389_v9 = vor.u32 %v1849_v63, %v1386_v0 }
  0x73   :  { %1045 = vmatmul.bf16.gmra.mxu2 %v1497_v2 }
  0x74   :  { %1094 = vmatmul.bf16.gmra.mxu3 %v1501_v3  ;;  %v1377_v3 = vor.u32 %v1852_v58, %v1376_v57  ;;  %v1865_v57 = vld [vmem:[%s2682_s0 + $0xdc] sm:$0xf] }
  0x75   :  { %v1450_v58 = vld [vmem:[%s2682_s0 + $0xf8] sm:$0xf0] }
  0x81   :  { %952 = vmatmul.bf16.gmra.mxu0 %v1521_v16 }
  0x82   :  { %1001 = vmatmul.bf16.gmra.mxu1 %v1525_v17 }
  0x83   :  { %1050 = vmatmul.bf16.gmra.mxu2 %v1529_v18 }
  0x84   :  { %1099 = vmatmul.bf16.gmra.mxu3 %v1533_v19 }
  0x91   :  { %957 = vmatmul.bf16.gmra.mxu0 %v1553_v28  ;;  %v1418_v28 = vld [vmem:[%s2682_s0 + $0xb8] sm:$0xf0] }
  0x92   :  { %1006 = vmatmul.bf16.gmra.mxu1 %v1557_v29  ;;  %v1421_v38 = vor.u32 %v1857_v27, %v1418_v28 }
  0x93   :  { %1055 = vmatmul.bf16.gmra.mxu2 %v1561_v30 }
  0x94   :  { %1104 = vmatmul.bf16.gmra.mxu3 %v1565_v31  ;;  %v1409_v31 = vor.u32 %v1860_v22, %v1408_v21  ;;  %v1480_v21 = vld [vmem:[%s2682_s0 + $0x118] sm:$0xf] }
  0x95   :  { %v1877_v22 = vld [vmem:[%s2682_s0 + $0x134] sm:$0xf0] }
  0x9e   :  { %v923_v43 = vpop.f32.mrf.mxu0 }
  0x9f   :  { %v972_v44 = vpop.f32.mrf.mxu1  ;;  %v924_v47 = vadd.f32 %v2374_v32, %v923_v43 }
  0xa1   :  { %v973_v48 = vadd.f32 %v972_v44, %v924_v47  ;;  %1118 = vmatmul.bf16.vlgmr.msrb.gmra.mxu0 %v1345_v41 }
  0xa2   :  { %1167 = vmatmul.bf16.vlgmr.msrb.gmra.mxu1 %v1349_v42 }
  0xa3   :  { %1216 = vmatmul.bf16.vlgmr.msrb.gmra.mxu2 %v1353_v45 }
  0xa4   :  { %1265 = vmatmul.bf16.vlgmr.msrb.gmra.mxu3 %v1357_v46 }
  0xa6   :  { %v1021_v49 = vpop.f32.mrf.mxu2  ;;  %v925_v52 = vpop.f32.mrf.mxu0 }
  0xa7   :  { %v1070_v50 = vpop.f32.mrf.mxu3  ;;  %v1022_v51 = vadd.f32 %v1021_v49, %v973_v48  ;;  %v974_v53 = vpop.f32.mrf.mxu1  ;;  %v926_v54 = vadd.f32 %v2374_v32, %v925_v52  ;;  %v1864_v52 = vld [vmem:[%s2682_s0 + $0xd4] sm:$0xf] }
  0xa9   :  { %v2402_v55 = vadd.f32 %v1070_v50, %v1022_v51  ;;  %v975_v56 = vadd.f32 %v974_v53, %v926_v54  ;;  %v1440_v50 = vld [vmem:[%s2682_s0 + $0xd0] sm:$0xf]  ;;  %v1442_v53 = vld [vmem:[%s2682_s0 + $0xf0] sm:$0xf0]  ;;  %v1448_v54 = vld [vmem:[%s2682_s0 + $0xd8] sm:$0xf] }
  0xaa   :  { %v1868_v51 = vld [vmem:[%s2682_s0 + $0xec] sm:$0xf0]  ;;  %v1445_v62 = vor.u32 %v1864_v52, %v1442_v53  ;;  %v1512_v52 = vld [vmem:[%s2682_s0 + $0x158] sm:$0xf] }
  0xab   :  { %v1441_v61 = vor.u32 %v1868_v51, %v1440_v50  ;;  %v1880_v50 = vld [vmem:[%s2682_s0 + $0x154] sm:$0xf]  ;;  %v1885_v53 = vld [vmem:[%s2682_s0 + $0x174] sm:$0xf0] }
  0xac   :  { %v1506_v51 = vld [vmem:[%s2682_s0 + $0x170] sm:$0xf0] }
  0xae   :  { %v1023_v1 = vpop.f32.mrf.mxu2  ;;  %v928_v6 = vpop.f32.mrf.mxu0 }
  0xaf   :  { %v1072_v2 = vpop.f32.mrf.mxu3  ;;  %v1024_v5 = vadd.f32 %v1023_v1, %v975_v56  ;;  %v977_v7 = vpop.f32.mrf.mxu1  ;;  %v929_v10 = vadd.f32 %v2374_v32, %v928_v6  ;;  %v1869_v56 = vld [vmem:[%s2682_s0 + $0xf4] sm:$0xf0] }
  0xb1   :  { %v2429_v11 = vadd.f32 %v1072_v2, %v1024_v5  ;;  %v978_v12 = vadd.f32 %v977_v7, %v929_v10  ;;  %1123 = vmatmul.bf16.gmra.mxu0 %v1377_v3  ;;  %v1449_v2 = vor.u32 %v1869_v56, %v1448_v54  ;;  %v1453_v3 = vor.u32 %v1865_v57, %v1450_v58  ;;  %v1881_v54 = vld [vmem:[%s2682_s0 + $0x15c] sm:$0xf] }
  0xb2   :  { %1172 = vmatmul.bf16.gmra.mxu1 %v1381_v4  ;;  %v1514_v56 = vld [vmem:[%s2682_s0 + $0x178] sm:$0xf0] }
  0xb3   :  { %1221 = vmatmul.bf16.gmra.mxu2 %v1385_v8 }
  0xb4   :  { %1270 = vmatmul.bf16.gmra.mxu3 %v1389_v9 }
  0xb6   :  { %v1026_v13 = vpop.f32.mrf.mxu2  ;;  %v930_v16 = vpop.f32.mrf.mxu0 }
  0xb7   :  { %v1075_v14 = vpop.f32.mrf.mxu3  ;;  %v1027_v15 = vadd.f32 %v1026_v13, %v978_v12  ;;  %v979_v17 = vpop.f32.mrf.mxu1  ;;  %v931_v18 = vadd.f32 %v2374_v32, %v930_v16  ;;  %v1472_v16 = vld [vmem:[%s2682_s0 + $0x110] sm:$0xf] }
  0xb9   :  { %v2432_v19 = vadd.f32 %v1075_v14, %v1027_v15  ;;  %v980_v20 = vadd.f32 %v979_v17, %v931_v18  ;;  %v1876_v17 = vld [vmem:[%s2682_s0 + $0x12c] sm:$0xf0]  ;;  %v1872_v18 = vld [vmem:[%s2682_s0 + $0x114] sm:$0xf] }
  0xba   :  { %v1473_v27 = vor.u32 %v1876_v17, %v1472_v16  ;;  %v1536_v16 = vld [vmem:[%s2682_s0 + $0x190] sm:$0xf] }
  0xbb   :  { %v1892_v17 = vld [vmem:[%s2682_s0 + $0x1ac] sm:$0xf0] }
  0xbe   :  { %v1028_v29 = vpop.f32.mrf.mxu2  ;;  %v933_v35 = vpop.f32.mrf.mxu0 }
  0xbf   :  { %v1077_v30 = vpop.f32.mrf.mxu3  ;;  %v1029_v34 = vadd.f32 %v1028_v29, %v980_v20  ;;  %v982_v36 = vpop.f32.mrf.mxu1  ;;  %v934_v39 = vadd.f32 %v2374_v32, %v933_v35  ;;  %v1474_v20 = vld [vmem:[%s2682_s0 + $0x130] sm:$0xf0] }
  0xc0   :  { %v1477_v28 = vor.u32 %v1872_v18, %v1474_v20  ;;  %v1888_v18 = vld [vmem:[%s2682_s0 + $0x194] sm:$0xf] }
  0xc1   :  { %v2459_v40 = vadd.f32 %v1077_v30, %v1029_v34  ;;  %v983_v41 = vadd.f32 %v982_v36, %v934_v39  ;;  %1128 = vmatmul.bf16.gmra.mxu0 %v1409_v31  ;;  %v1485_v34 = vor.u32 %v1873_v23, %v1482_v24  ;;  %v1538_v20 = vld [vmem:[%s2682_s0 + $0x1b0] sm:$0xf0]  ;;  %v1889_v23 = vld [vmem:[%s2682_s0 + $0x19c] sm:$0xf] }
  0xc2   :  { %1177 = vmatmul.bf16.gmra.mxu1 %v1413_v33  ;;  %v1481_v33 = vor.u32 %v1877_v22, %v1480_v21  ;;  %v1544_v21 = vld [vmem:[%s2682_s0 + $0x198] sm:$0xf]  ;;  %v1546_v24 = vld [vmem:[%s2682_s0 + $0x1b8] sm:$0xf0] }
  0xc3   :  { %1226 = vmatmul.bf16.gmra.mxu2 %v1417_v37  ;;  %v1893_v22 = vld [vmem:[%s2682_s0 + $0x1b4] sm:$0xf0] }
  0xc4   :  { %1275 = vmatmul.bf16.gmra.mxu3 %v1421_v38 }
  0xc6   :  { %v1031_v42 = vpop.f32.mrf.mxu2  ;;  %v935_v45 = vpop.f32.mrf.mxu0 }
  0xc7   :  { %v1080_v43 = vpop.f32.mrf.mxu3  ;;  %v1032_v44 = vadd.f32 %v1031_v42, %v983_v41  ;;  %v984_v46 = vpop.f32.mrf.mxu1  ;;  %v936_v47 = vadd.f32 %v2374_v32, %v935_v45 }
  0xc9   :  { %v2462_v48 = vadd.f32 %v1080_v43, %v1032_v44  ;;  %v985_v49 = vadd.f32 %v984_v46, %v936_v47  ;;  %v1504_v47 = vld [vmem:[%s2682_s0 + $0x150] sm:$0xf] }
  0xce   :  { %v1033_v59 = vpop.f32.mrf.mxu2  ;;  %v938_v0 = vpop.f32.mrf.mxu0 }
  0xcf   :  { %v1082_v60 = vpop.f32.mrf.mxu3  ;;  %v1034_v63 = vadd.f32 %v1033_v59, %v985_v49  ;;  %v987_v1 = vpop.f32.mrf.mxu1  ;;  %v939_v4 = vadd.f32 %v2374_v32, %v938_v0  ;;  %v1884_v49 = vld [vmem:[%s2682_s0 + $0x16c] sm:$0xf0]  ;;  %v1513_v0 = vor.u32 %v1885_v53, %v1512_v52  ;;  %v1896_v52 = vld [vmem:[%s2682_s0 + $0x1d4] sm:$0xf] }
  0xd0   :  { %v1505_v59 = vor.u32 %v1884_v49, %v1504_v47  ;;  %v1570_v53 = vld [vmem:[%s2682_s0 + $0x1f0] sm:$0xf0] }
  0xd1   :  { %v2489_v5 = vadd.f32 %v1082_v60, %v1034_v63  ;;  %v988_v6 = vadd.f32 %v987_v1, %v939_v4  ;;  %1133 = vmatmul.bf16.gmra.mxu0 %v1441_v61  ;;  %v1509_v60 = vor.u32 %v1880_v50, %v1506_v51  ;;  %v1517_v1 = vor.u32 %v1881_v54, %v1514_v56  ;;  %v1568_v50 = vld [vmem:[%s2682_s0 + $0x1d0] sm:$0xf]  ;;  %v1576_v54 = vld [vmem:[%s2682_s0 + $0x1d8] sm:$0xf] }
  0xd2   :  { %1182 = vmatmul.bf16.gmra.mxu1 %v1445_v62  ;;  %v1900_v51 = vld [vmem:[%s2682_s0 + $0x1ec] sm:$0xf0]  ;;  %v1901_v56 = vld [vmem:[%s2682_s0 + $0x1f4] sm:$0xf0] }
  0xd3   :  { %1231 = vmatmul.bf16.gmra.mxu2 %v1449_v2 }
  0xd4   :  { %1280 = vmatmul.bf16.gmra.mxu3 %v1453_v3 }
  0xd6   :  { %v1036_v7 = vpop.f32.mrf.mxu2  ;;  %v940_v10 = vpop.f32.mrf.mxu0 }
  0xd7   :  { %v1085_v8 = vpop.f32.mrf.mxu3  ;;  %v1037_v9 = vadd.f32 %v1036_v7, %v988_v6  ;;  %v989_v12 = vpop.f32.mrf.mxu1  ;;  %v941_v13 = vadd.f32 %v2374_v32, %v940_v10 }
  0xd9   :  { %v2492_v14 = vadd.f32 %v1085_v8, %v1037_v9  ;;  %v990_v15 = vadd.f32 %v989_v12, %v941_v13 }
  0xde   :  { %v1038_v25 = vpop.f32.mrf.mxu2  ;;  %v943_v30 = vpop.f32.mrf.mxu0 }
  0xdf   :  { %v1087_v26 = vpop.f32.mrf.mxu3  ;;  %v1039_v29 = vadd.f32 %v1038_v25, %v990_v15  ;;  %v992_v31 = vpop.f32.mrf.mxu1  ;;  %v944_v35 = vadd.f32 %v2374_v32, %v943_v30 }
  0xe1   :  { %v2519_v36 = vadd.f32 %v1087_v26, %v1039_v29  ;;  %v993_v37 = vadd.f32 %v992_v31, %v944_v35  ;;  %1138 = vmatmul.bf16.gmra.mxu0 %v1473_v27  ;;  %v1537_v27 = vor.u32 %v1892_v17, %v1536_v16 }
  0xe2   :  { %1187 = vmatmul.bf16.gmra.mxu1 %v1477_v28  ;;  %v1541_v28 = vor.u32 %v1888_v18, %v1538_v20 }
  0xe3   :  { %1236 = vmatmul.bf16.gmra.mxu2 %v1481_v33  ;;  %v1545_v33 = vor.u32 %v1893_v22, %v1544_v21 }
  0xe4   :  { %1285 = vmatmul.bf16.gmra.mxu3 %v1485_v34  ;;  %v1549_v34 = vor.u32 %v1889_v23, %v1546_v24 }
  0xe6   :  { %v1041_v38 = vpop.f32.mrf.mxu2  ;;  %v945_v42 = vpop.f32.mrf.mxu0 }
  0xe7   :  { %v1090_v39 = vpop.f32.mrf.mxu3  ;;  %v1042_v41 = vadd.f32 %v1041_v38, %v993_v37  ;;  %v994_v43 = vpop.f32.mrf.mxu1  ;;  %v946_v44 = vadd.f32 %v2374_v32, %v945_v42 }
  0xe9   :  { %v2522_v45 = vadd.f32 %v1090_v39, %v1042_v41  ;;  %v995_v46 = vadd.f32 %v994_v43, %v946_v44 }
  0xee   :  { %v1043_v57 = vpop.f32.mrf.mxu2  ;;  %v948_v62 = vpop.f32.mrf.mxu0 }
  0xef   :  { %v1092_v58 = vpop.f32.mrf.mxu3  ;;  %v1044_v61 = vadd.f32 %v1043_v57, %v995_v46  ;;  %v997_v63 = vpop.f32.mrf.mxu1  ;;  %v949_v2 = vadd.f32 %v2374_v32, %v948_v62  ;;  %v1897_v57 = vld [vmem:[%s2682_s0 + $0x1dc] sm:$0xf]  ;;  %v1573_v62 = vor.u32 %v1896_v52, %v1570_v53 }
  0xf1   :  { %v2549_v3 = vadd.f32 %v1092_v58, %v1044_v61  ;;  %v998_v4 = vadd.f32 %v997_v63, %v949_v2  ;;  %1143 = vmatmul.bf16.gmra.mxu0 %v1505_v59  ;;  %v1578_v58 = vld [vmem:[%s2682_s0 + $0x1f8] sm:$0xf0]  ;;  %v1569_v61 = vor.u32 %v1900_v51, %v1568_v50  ;;  %v1577_v2 = vor.u32 %v1901_v56, %v1576_v54 }
  0xf2   :  { %1192 = vmatmul.bf16.gmra.mxu1 %v1509_v60 }
  0xf3   :  { %1241 = vmatmul.bf16.gmra.mxu2 %v1513_v0 }
  0xf4   :  { %1290 = vmatmul.bf16.gmra.mxu3 %v1517_v1 }
  0xf6   :  { %v1046_v6 = vpop.f32.mrf.mxu2  ;;  %v950_v9 = vpop.f32.mrf.mxu0 }
  0xf7   :  { %v1095_v7 = vpop.f32.mrf.mxu3  ;;  %v1047_v8 = vadd.f32 %v1046_v6, %v998_v4  ;;  %v999_v10 = vpop.f32.mrf.mxu1  ;;  %v951_v12 = vadd.f32 %v2374_v32, %v950_v9  ;;  %v1581_v4 = vor.u32 %v1897_v57, %v1578_v58 }
  0xf9   :  { %v2552_v13 = vadd.f32 %v1095_v7, %v1047_v8  ;;  %v1000_v15 = vadd.f32 %v999_v10, %v951_v12 }
  0xfe   :  { %v1048_v25 = vpop.f32.mrf.mxu2  ;;  %v953_v30 = vpop.f32.mrf.mxu0 }
  0xff   :  { %v1097_v26 = vpop.f32.mrf.mxu3  ;;  %v1049_v29 = vadd.f32 %v1048_v25, %v1000_v15  ;;  %v1002_v31 = vpop.f32.mrf.mxu1  ;;  %v954_v35 = vadd.f32 %v2374_v32, %v953_v30 }
 0x101   :  { %v2579_v37 = vadd.f32 %v1097_v26, %v1049_v29  ;;  %v1003_v38 = vadd.f32 %v1002_v31, %v954_v35  ;;  %1148 = vmatmul.bf16.gmra.mxu0 %v1537_v27 }
 0x102   :  { %1197 = vmatmul.bf16.gmra.mxu1 %v1541_v28 }
 0x103   :  { %1246 = vmatmul.bf16.gmra.mxu2 %v1545_v33 }
 0x104   :  { %1295 = vmatmul.bf16.gmra.mxu3 %v1549_v34 }
 0x106   :  { %v1051_v39 = vpop.f32.mrf.mxu2  ;;  %v955_v43 = vpop.f32.mrf.mxu0 }
 0x107   :  { %v1100_v41 = vpop.f32.mrf.mxu3  ;;  %v1052_v42 = vadd.f32 %v1051_v39, %v1003_v38  ;;  %v1004_v44 = vpop.f32.mrf.mxu1  ;;  %v956_v46 = vadd.f32 %v2374_v32, %v955_v43 }
 0x109   :  { %v2582_v47 = vadd.f32 %v1100_v41, %v1052_v42  ;;  %v1005_v49 = vadd.f32 %v1004_v44, %v956_v46 }
 0x10e   :  { %v1053_v59 = vpop.f32.mrf.mxu2  ;;  %v958_v0 = vpop.f32.mrf.mxu0 }
 0x10f   :  { %v1102_v60 = vpop.f32.mrf.mxu3  ;;  %v1054_v63 = vadd.f32 %v1053_v59, %v1005_v49  ;;  %v1007_v1 = vpop.f32.mrf.mxu1  ;;  %v959_v6 = vadd.f32 %v2374_v32, %v958_v0 }
 0x111   :  { %v2609_v7 = vadd.f32 %v1102_v60, %v1054_v63  ;;  %v1008_v8 = vadd.f32 %v1007_v1, %v959_v6  ;;  %1153 = vmatmul.bf16.gmra.mxu0 %v1569_v61 }
 0x112   :  { %1202 = vmatmul.bf16.gmra.mxu1 %v1573_v62 }
 0x113   :  { %1251 = vmatmul.bf16.gmra.mxu2 %v1577_v2 }
 0x114   :  { %1300 = vmatmul.bf16.gmra.mxu3 %v1581_v4 }
 0x116   :  { %v1056_v9 = vpop.f32.mrf.mxu2  ;;  %v960_v15 = vpop.f32.mrf.mxu0 }
 0x117   :  { %v1105_v10 = vpop.f32.mrf.mxu3  ;;  %v1057_v12 = vadd.f32 %v1056_v9, %v1008_v8  ;;  %v1009_v16 = vpop.f32.mrf.mxu1  ;;  %v961_v17 = vadd.f32 %v2374_v32, %v960_v15 }
 0x119   :  { %v2612_v18 = vadd.f32 %v1105_v10, %v1057_v12  ;;  %v1010_v20 = vadd.f32 %v1009_v16, %v961_v17 }
 0x11e   :  { %v1058_v21 = vpop.f32.mrf.mxu2  ;;  %v1119_v24 = vpop.f32.mrf.mxu0 }
 0x11f   :  { %v1107_v22 = vpop.f32.mrf.mxu3  ;;  %v1059_v23 = vadd.f32 %v1058_v21, %v1010_v20  ;;  %v1168_v25 = vpop.f32.mrf.mxu1  ;;  %v1120_v27 = vadd.f32 %v1119_v24, %v2402_v55 }
 0x121   :  { %v2614_v26 = vadd.f32 %v1107_v22, %v1059_v23  ;;  %v1169_v28 = vadd.f32 %v1168_v25, %v1120_v27 }
 0x126   :  { %v1217_v29 = vpop.f32.mrf.mxu2  ;;  %v1121_v33 = vpop.f32.mrf.mxu0 }
 0x127   :  { %v1266_v30 = vpop.f32.mrf.mxu3  ;;  %v1218_v31 = vadd.f32 %v1217_v29, %v1169_v28  ;;  %v1170_v34 = vpop.f32.mrf.mxu1  ;;  %v1122_v32 = vadd.f32 %v1121_v33, %v2429_v11 }
 0x129   :  { %v1267_v35 = vadd.f32 %v1266_v30, %v1218_v31  ;;  %v1171_v38 = vadd.f32 %v1170_v34, %v1122_v32 }
 0x12b   :  { %1306 = vst [vmem:[%s2683_s3] sm:$0xff] %v1267_v35 }
 0x12e   :  { %v1219_v39 = vpop.f32.mrf.mxu2  ;;  %v1124_v43 = vpop.f32.mrf.mxu0 }
 0x12f   :  { %v1268_v41 = vpop.f32.mrf.mxu3  ;;  %v1220_v42 = vadd.f32 %v1219_v39, %v1171_v38  ;;  %v1173_v44 = vpop.f32.mrf.mxu1  ;;  %v1125_v46 = vadd.f32 %v1124_v43, %v2432_v19 }
 0x131   :  { %v1269_v55 = vadd.f32 %v1268_v41, %v1220_v42  ;;  %v1174_v49 = vadd.f32 %v1173_v44, %v1125_v46 }
 0x133   :  { %1307 = vst [vmem:[%s2683_s3 + $0x8] sm:$0xff] %v1269_v55 }
 0x136   :  { %v1222_v50 = vpop.f32.mrf.mxu2  ;;  %v1126_v52 = vpop.f32.mrf.mxu0 }
 0x137   :  { %v1271_v11 = vpop.f32.mrf.mxu3  ;;  %v1223_v51 = vadd.f32 %v1222_v50, %v1174_v49  ;;  %v1175_v53 = vpop.f32.mrf.mxu1  ;;  %v1127_v56 = vadd.f32 %v1126_v52, %v2459_v40 }
 0x139   :  { %v1272_v54 = vadd.f32 %v1271_v11, %v1223_v51  ;;  %v1176_v57 = vadd.f32 %v1175_v53, %v1127_v56 }
 0x13b   :  { %1308 = vst [vmem:[%s2683_s3 + $0x10] sm:$0xff] %v1272_v54 }
 0x13e   :  { %v1224_v58 = vpop.f32.mrf.mxu2  ;;  %v1129_v60 = vpop.f32.mrf.mxu0 }
 0x13f   :  { %v1273_v19 = vpop.f32.mrf.mxu3  ;;  %v1225_v59 = vadd.f32 %v1224_v58, %v1176_v57  ;;  %v1178_v61 = vpop.f32.mrf.mxu1  ;;  %v1130_v63 = vadd.f32 %v1129_v60, %v2462_v48 }
 0x141   :  { %v1274_v62 = vadd.f32 %v1273_v19, %v1225_v59  ;;  %v1179_v0 = vadd.f32 %v1178_v61, %v1130_v63 }
 0x143   :  { %1309 = vst [vmem:[%s2683_s3 + $0x18] sm:$0xff] %v1274_v62 }
 0x146   :  { %v1227_v1 = vpop.f32.mrf.mxu2  ;;  %v1131_v4 = vpop.f32.mrf.mxu0 }
 0x147   :  { %v1276_v40 = vpop.f32.mrf.mxu3  ;;  %v1228_v2 = vadd.f32 %v1227_v1, %v1179_v0  ;;  %v1180_v6 = vpop.f32.mrf.mxu1  ;;  %v1132_v9 = vadd.f32 %v1131_v4, %v2489_v5 }
 0x149   :  { %v1277_v8 = vadd.f32 %v1276_v40, %v1228_v2  ;;  %v1181_v10 = vadd.f32 %v1180_v6, %v1132_v9 }
 0x14b   :  { %1310 = vst [vmem:[%s2683_s3 + $0x20] sm:$0xff] %v1277_v8 }
 0x14e   :  { %v1229_v12 = vpop.f32.mrf.mxu2  ;;  %v1134_v16 = vpop.f32.mrf.mxu0 }
 0x14f   :  { %v1278_v48 = vpop.f32.mrf.mxu3  ;;  %v1230_v15 = vadd.f32 %v1229_v12, %v1181_v10  ;;  %v1183_v17 = vpop.f32.mrf.mxu1  ;;  %v1135_v21 = vadd.f32 %v1134_v16, %v2492_v14 }
 0x151   :  { %v1279_v20 = vadd.f32 %v1278_v48, %v1230_v15  ;;  %v1184_v22 = vadd.f32 %v1183_v17, %v1135_v21 }
 0x153   :  { %1311 = vst [vmem:[%s2683_s3 + $0x28] sm:$0xff] %v1279_v20 }
 0x156   :  { %v1232_v23 = vpop.f32.mrf.mxu2  ;;  %v1136_v25 = vpop.f32.mrf.mxu0 }
 0x157   :  { %v1281_v5 = vpop.f32.mrf.mxu3  ;;  %v1233_v24 = vadd.f32 %v1232_v23, %v1184_v22  ;;  %v1185_v27 = vpop.f32.mrf.mxu1  ;;  %v1137_v29 = vadd.f32 %v1136_v25, %v2519_v36 }
 0x159   :  { %v1282_v28 = vadd.f32 %v1281_v5, %v1233_v24  ;;  %v1186_v30 = vadd.f32 %v1185_v27, %v1137_v29 }
 0x15b   :  { %1312 = vst [vmem:[%s2683_s3 + $0x30] sm:$0xff] %v1282_v28 }
 0x15e   :  { %v1234_v31 = vpop.f32.mrf.mxu2  ;;  %v1139_v34 = vpop.f32.mrf.mxu0 }
 0x15f   :  { %v1283_v14 = vpop.f32.mrf.mxu3  ;;  %v1235_v33 = vadd.f32 %v1234_v31, %v1186_v30  ;;  %v1188_v35 = vpop.f32.mrf.mxu1  ;;  %v1140_v38 = vadd.f32 %v1139_v34, %v2522_v45 }
 0x161   :  { %v1284_v32 = vadd.f32 %v1283_v14, %v1235_v33  ;;  %v1189_v39 = vadd.f32 %v1188_v35, %v1140_v38 }
 0x163   :  { %1313 = vst [vmem:[%s2683_s3 + $0x38] sm:$0xff] %v1284_v32 }
 0x166   :  { %v1237_v41 = vpop.f32.mrf.mxu2  ;;  %v1141_v43 = vpop.f32.mrf.mxu0 }
 0x167   :  { %v1286_v36 = vpop.f32.mrf.mxu3  ;;  %v1238_v42 = vadd.f32 %v1237_v41, %v1189_v39  ;;  %v1190_v44 = vpop.f32.mrf.mxu1  ;;  %v1142_v46 = vadd.f32 %v1141_v43, %v2549_v3 }
 0x169   :  { %v1287_v55 = vadd.f32 %v1286_v36, %v1238_v42  ;;  %v1191_v49 = vadd.f32 %v1190_v44, %v1142_v46 }
 0x16b   :  { %1314 = vst [vmem:[%s2683_s3 + $0x40] sm:$0xff] %v1287_v55 }
 0x16e   :  { %v1239_v50 = vpop.f32.mrf.mxu2  ;;  %v1144_v51 = vpop.f32.mrf.mxu0 }
 0x16f   :  { %v1288_v45 = vpop.f32.mrf.mxu3  ;;  %v1240_v11 = vadd.f32 %v1239_v50, %v1191_v49  ;;  %v1193_v52 = vpop.f32.mrf.mxu1  ;;  %v1145_v54 = vadd.f32 %v1144_v51, %v2552_v13 }
 0x171   :  { %v1289_v53 = vadd.f32 %v1288_v45, %v1240_v11  ;;  %v1194_v56 = vadd.f32 %v1193_v52, %v1145_v54 }
 0x173   :  { %1315 = vst [vmem:[%s2683_s3 + $0x48] sm:$0xff] %v1289_v53 }
 0x176   :  { %v1242_v57 = vpop.f32.mrf.mxu2  ;;  %v1146_v19 = vpop.f32.mrf.mxu0 }
 0x177   :  { %v1291_v3 = vpop.f32.mrf.mxu3  ;;  %v1243_v58 = vadd.f32 %v1242_v57, %v1194_v56  ;;  %v1195_v59 = vpop.f32.mrf.mxu1  ;;  %v1147_v61 = vadd.f32 %v1146_v19, %v2579_v37 }
 0x179   :  { %v1292_v60 = vadd.f32 %v1291_v3, %v1243_v58  ;;  %v1196_v62 = vadd.f32 %v1195_v59, %v1147_v61 }
 0x17b   :  { %1316 = vst [vmem:[%s2683_s3 + $0x50] sm:$0xff] %v1292_v60 }
 0x17e   :  { %v1244_v63 = vpop.f32.mrf.mxu2  ;;  %v1149_v1 = vpop.f32.mrf.mxu0 }
 0x17f   :  { %v1293_v13 = vpop.f32.mrf.mxu3  ;;  %v1245_v0 = vadd.f32 %v1244_v63, %v1196_v62  ;;  %v1198_v40 = vpop.f32.mrf.mxu1  ;;  %v1150_v4 = vadd.f32 %v1149_v1, %v2582_v47 }
 0x181   :  { %v1294_v2 = vadd.f32 %v1293_v13, %v1245_v0  ;;  %v1199_v6 = vadd.f32 %v1198_v40, %v1150_v4 }
 0x183   :  { %1317 = vst [vmem:[%s2683_s3 + $0x58] sm:$0xff] %v1294_v2 }
 0x186   :  { %v1247_v8 = vpop.f32.mrf.mxu2  ;;  %v1151_v10 = vpop.f32.mrf.mxu0 }
 0x187   :  { %v1296_v37 = vpop.f32.mrf.mxu3  ;;  %v1248_v9 = vadd.f32 %v1247_v8, %v1199_v6  ;;  %v1200_v12 = vpop.f32.mrf.mxu1  ;;  %v1152_v15 = vadd.f32 %v1151_v10, %v2609_v7 }
 0x189   :  { %v1297_v48 = vadd.f32 %v1296_v37, %v1248_v9  ;;  %v1201_v16 = vadd.f32 %v1200_v12, %v1152_v15 }
 0x18b   :  { %1318 = vst [vmem:[%s2683_s3 + $0x60] sm:$0xff] %v1297_v48 }
 0x18e   :  { %v1249_v17 = vpop.f32.mrf.mxu2  ;;  %v1154_v21 = vpop.f32.mrf.mxu0 }
 0x18f   :  { %v1298_v47 = vpop.f32.mrf.mxu3  ;;  %v1250_v20 = vadd.f32 %v1249_v17, %v1201_v16  ;;  %v1155_v23 = vadd.f32 %v1154_v21, %v2612_v18  ;;  %v1203_v5 = vpop.f32.mrf.mxu1 }
 0x191   :  { %v1299_v22 = vadd.f32 %v1298_v47, %v1250_v20  ;;  %v1204_v24 = vadd.f32 %v1203_v5, %v1155_v23 }
 0x193   :  { %1319 = vst [vmem:[%s2683_s3 + $0x68] sm:$0xff] %v1299_v22 }
 0x196   :  { %v1252_v25 = vpop.f32.mrf.mxu2  ;;  %v1156_v28 = vpop.f32.mrf.mxu0 }
 0x197   :  { %v1301_v7 = vpop.f32.mrf.mxu3  ;;  %v1253_v27 = vadd.f32 %v1252_v25, %v1204_v24  ;;  %v1157_v30 = vadd.f32 %v1156_v28, %v2614_v26  ;;  %v1205_v31 = vpop.f32.mrf.mxu1 }
 0x199   :  { %v1302_v29 = vadd.f32 %v1301_v7, %v1253_v27  ;;  %v1206_v14 = vadd.f32 %v1205_v31, %v1157_v30 }
 0x19b   :  { %1320 = vst [vmem:[%s2683_s3 + $0x70] sm:$0xff] %v1302_v29 }
 0x19e   :  { %v1254_v18 = vpop.f32.mrf.mxu2 }
 0x19f   :  { %v1255_v33 = vadd.f32 %v1254_v18, %v1206_v14  ;;  %v1303_v34 = vpop.f32.mrf.mxu3 }
 0x1a1   :  { %v1304_v35 = vadd.f32 %v1303_v34, %v1255_v33 }
 0x1a3   :  { %1321 = vst [vmem:[%s2683_s3 + $0x78] sm:$0xff] %v1304_v35 }

</bundles_post_ra>
